<compile_context>
chip_gen: v7x
topology: tpu7x:2x2x1
jax: 0.10.0
libtpu: 0.0.40
codegen_flags: <defaults>
</compile_context>

<pallas_src>
import math

import jax
import jax.numpy as jnp
from jax import lax
from jax.experimental import pallas as pl
from jax.experimental.pallas import tpu as pltpu

ENTITY_TYPES = {'PERSON': 1, 'PROFESSION': 2, 'ORGANIZATION': 3, 'FAMILY': 4}
RELATION_TYPES = ('WORKS_AS', 'MEMBER_OF', 'FOUNDED_BY', 'SPOUSE', 'PARENT_OF', 'SIBLING')
NUM_BIOES_LABELS = 1 + 4 * len(ENTITY_TYPES)   # 17
NUM_REL = len(RELATION_TYPES)                  # 6

# ----------------------------- small test shapes -----------------------------
B = 2          # batch
S = 16         # seq len
H = 32         # "bert" hidden size
NER_HID = 256  # ner classifier hidden
E = 4          # num entities in the sample
GAT_OUT = 64   # gat2 output dim
REL_HID = 256  # relation classifier hidden

LANE = 128
SUB = 8
NER_OUT_PAD = LANE   # pad 17 -> 128 for lane-dense stores
REL_OUT_PAD = LANE   # pad 6  -> 128 for lane-dense stores
ENT_OUT_PAD = LANE   # pad H=32 -> 128
ATT_OUT_PAD = LANE   # pad S=16 -> 128
E_PAD = SUB          # pad entities 4 -> 8 sublanes
P_PAD = SUB          # pad pairs    4 -> 8 sublanes

_VMEM = pl.BlockSpec(memory_space=pltpu.MemorySpace.VMEM)


def _lane_pad(a, width):
    """Pad last dim with zeros up to `width` so the store is lane-dense."""
    p = width - a.shape[-1]
    if p == 0:
        return a
    return jnp.concatenate([a, jnp.zeros((a.shape[0], p), a.dtype)], axis=-1)


# ============================ fused forward kernel ===========================
def _fused_kernel(seq_ref, mask_ref, pool_ref, pair_ref,
                  ner_w1_ref, ner_b1_ref, ner_w2_ref, ner_b2_ref,
                  wqkv_ref, bqkv_ref, bq_ref,
                  rel_w1_ref, rel_b1_ref, rel_g_ref, rel_bta_ref,
                  rel_w2_ref, rel_b2_ref,
                  ner_o_ref, ent_o_ref, attn_o_ref, rel_o_ref):
    Hh = bq_ref.shape[1]
    Ss = pool_ref.shape[1]
    n_heads = rel_g_ref.shape[0]
    rel_hid = rel_g_ref.shape[2]

    # ---- 1) NER classifier over all B*S tokens (batch collapsed into rows) ----
    x = seq_ref[...]                                                    # (B*S, H) f32
    xb = x.astype(jnp.bfloat16)
    h = jnp.dot(xb, ner_w1_ref[...], preferred_element_type=jnp.float32) + ner_b1_ref[...]
    h = jnp.maximum(h, 0.0)                                             # ReLU; Dropout identity (eval)
    ner_o_ref[...] = (jnp.dot(h.astype(jnp.bfloat16), ner_w2_ref[...],
                              preferred_element_type=jnp.float32)
                      + ner_b2_ref[...])                                # (B*S, 128) lane-dense

    # ---- 2) entity span mean-pool (batch 0) as one MXU matmul -----------------
    ctx = x[:Ss, :]                                                     # (S, H) = batch-0 rows
    ent = jnp.dot(pool_ref[...], ctx, preferred_element_type=jnp.float32)  # (E_pad, H) f32

    # ---- 3) ContextAwareAttention (wq fused into one (H,3H) projection) -------
    qkv = (jnp.dot(ctx.astype(jnp.bfloat16), wqkv_ref[...],
                   preferred_element_type=jnp.float32) + bqkv_ref[...])    # (S, 3H)
    q_tok = qkv[:, :Hh]
    k = qkv[:, Hh:2 * Hh]
    v = qkv[:, 2 * Hh:]
    # q = ent @ wq + bq == pool @ (ctx @ wq) + bq   (matmul associativity)
    q = jnp.dot(pool_ref[...], q_tok, preferred_element_type=jnp.float32) + bq_ref[...]
    scores = lax.dot_general(q, k, (((1,), (1,)), ((), ())),
                             preferred_element_type=jnp.float32) * (1.0 / math.sqrt(Hh))
    mask = mask_ref[...]                                                # (1, S) broadcast over entities
    scores = jnp.where(mask < 0.5, jnp.float32(-1e9), scores)
    scores = scores - jnp.max(scores, axis=-1, keepdims=True)
    w = jnp.exp(scores)
    w = w * pl.reciprocal(jnp.sum(w, axis=-1, keepdims=True), approx=True)
    attn_o_ref[...] = _lane_pad(w, attn_o_ref.shape[1])                 # lane-dense store
    ent_o_ref[...] = _lane_pad(ent + jnp.dot(w, v, preferred_element_type=jnp.float32),
                               ent_o_ref.shape[1])                      # residual folded in

    # ---- 4) six relation heads, fused; per-head w2 as a lane reduction --------
    pf = pair_ref[...].astype(jnp.bfloat16)                             # (P_pad, 2*GAT_OUT) = (8, 128)
    hall = (jnp.dot(pf, rel_w1_ref[...], preferred_element_type=jnp.float32)
            + rel_b1_ref[...])                                          # (P_pad, 6*256) f32
    inv_hid = jnp.float32(1.0 / rel_hid)
    logit_cols = []
    for r in range(n_heads):                                            # unrolled; 256-lane aligned slices
        hr = hall[:, r * rel_hid:(r + 1) * rel_hid]                     # (P_pad, 256)
        mu = jnp.sum(hr, axis=-1, keepdims=True) * inv_hid
        msq = jnp.sum(hr * hr, axis=-1, keepdims=True) * inv_hid
        var = msq - mu * mu                                             # biased var (torch LN), eps=1e-5
        hr_n = (hr - mu) * lax.rsqrt(var + 1e-5) * rel_g_ref[r] + rel_bta_ref[r]
        hr_n = jnp.maximum(hr_n, 0.0)                                   # ReLU; Dropout identity (eval)
        logit_cols.append(jnp.sum(hr_n * rel_w2_ref[r], axis=-1, keepdims=True))  # (P_pad, 1)
    logits = jnp.concatenate(logit_cols, axis=-1)                       # (P_pad, 6)
    rel_o_ref[...] = _lane_pad(logits, rel_o_ref.shape[1]) + rel_b2_ref[...]      # (P_pad, 128)


def _fused_call(seq_flat, mask0, pool, pair_pad, fp):
    n_tok = seq_flat.shape[0]
    return pl.pallas_call(
        _fused_kernel,
        out_shape=(
            jax.ShapeDtypeStruct((n_tok, NER_OUT_PAD), jnp.float32),   # padded NER logits
            jax.ShapeDtypeStruct((E_PAD, ENT_OUT_PAD), jnp.float32),   # entities + attended (padded)
            jax.ShapeDtypeStruct((E_PAD, ATT_OUT_PAD), jnp.float32),   # attention weights (padded)
            jax.ShapeDtypeStruct((P_PAD, REL_OUT_PAD), jnp.float32),   # padded relation logits
        ),
        in_specs=[_VMEM] * 17,
        out_specs=(_VMEM, _VMEM, _VMEM, _VMEM),
    )(seq_flat, mask0, pool, pair_pad,
      fp["ner_w1"], fp["ner_b1"], fp["ner_w2"], fp["ner_b2"],
      fp["wqkv"], fp["bqkv"], fp["bq"],
      fp["rel_w1"], fp["rel_b1"], fp["rel_g"], fp["rel_beta"],
      fp["rel_w2"], fp["rel_b2"])


# ============================ parameter handling =============================
def xavier(key, shape):
    fan_in, fan_out = shape
    limit = math.sqrt(6.0 / (fan_in + fan_out))
    return jax.random.uniform(key, shape, jnp.float32, -limit, limit)


def init_params(key):
    """Per-module params, mirroring the torch module structure (6 distinct rel heads)."""
    ks = jax.random.split(key, 10 + 2 * NUM_REL)
    p = {}
    # ner classifier (weights stored (in, out) so x @ W == torch x @ W.T)
    p["ner_w1"] = xavier(ks[0], (H, NER_HID))
    p["ner_b1"] = jnp.zeros((1, NER_HID), jnp.float32)
    p["ner_w2"] = xavier(ks[1], (NER_HID, NUM_BIOES_LABELS))
    p["ner_b2"] = jnp.zeros((1, NUM_BIOES_LABELS), jnp.float32)
    # context attention
    p["wq"] = xavier(ks[2], (H, H)); p["bq"] = 0.01 * jax.random.normal(ks[3], (1, H), jnp.float32)
    p["wk"] = xavier(ks[4], (H, H)); p["bk"] = 0.01 * jax.random.normal(ks[5], (1, H), jnp.float32)
    p["wv"] = xavier(ks[6], (H, H)); p["bv"] = 0.01 * jax.random.normal(ks[7], (1, H), jnp.float32)
    # six relation classifier heads
    p["rel"] = {}
    for i, r in enumerate(RELATION_TYPES):
        p["rel"][r] = {
            "w1": xavier(ks[10 + 2 * i], (2 * GAT_OUT, REL_HID)),
            "b1": jnp.zeros((1, REL_HID), jnp.float32),
            "gamma": jnp.ones((1, REL_HID), jnp.float32),
            "beta": jnp.zeros((1, REL_HID), jnp.float32),
            "w2": xavier(ks[10 + 2 * i + 1], (REL_HID, 1)),
            "b2": jnp.zeros((1, 1), jnp.float32),
        }
    return p


def fuse_params(p):
    """Kernel-ready fused/padded/bf16 weights. Call ONCE at setup (hoisted out of forward)."""
    fp = {}
    # MXU-facing weights stored bf16 (f32 accumulation in-kernel); biases stay f32.
    fp["ner_w1"] = p["ner_w1"].astype(jnp.bfloat16)
    fp["ner_b1"] = p["ner_b1"]
    fp["ner_w2"] = jnp.pad(p["ner_w2"],
                           ((0, 0), (0, NER_OUT_PAD - NUM_BIOES_LABELS))).astype(jnp.bfloat16)
    fp["ner_b2"] = jnp.pad(p["ner_b2"], ((0, 0), (0, NER_OUT_PAD - NUM_BIOES_LABELS)))
    # q/k/v fused into one (H, 3H) projection; q-bias applied after span pooling.
    fp["wqkv"] = jnp.concatenate([p["wq"], p["wk"], p["wv"]], axis=1).astype(jnp.bfloat16)  # (H, 3H)
    fp["bqkv"] = jnp.concatenate([jnp.zeros((1, H), jnp.float32), p["bk"], p["bv"]], axis=1)  # (1, 3H)
    fp["bq"] = p["bq"]
    # relation heads: stacked first layer, per-head LN params, per-head w2 ROWS (no block-diag).
    fp["rel_w1"] = jnp.concatenate([p["rel"][r]["w1"] for r in RELATION_TYPES],
                                   axis=1).astype(jnp.bfloat16)                           # (128, 6*256)
    fp["rel_b1"] = jnp.concatenate([p["rel"][r]["b1"] for r in RELATION_TYPES], axis=1)   # (1, 6*256)
    fp["rel_g"] = jnp.stack([p["rel"][r]["gamma"] for r in RELATION_TYPES])               # (6, 1, 256)
    fp["rel_beta"] = jnp.stack([p["rel"][r]["beta"] for r in RELATION_TYPES])             # (6, 1, 256)
    fp["rel_w2"] = jnp.stack([p["rel"][r]["w2"].T for r in RELATION_TYPES])               # (6, 1, 256)
    b2 = jnp.concatenate([p["rel"][r]["b2"] for r in RELATION_TYPES], axis=1)             # (1, 6)
    fp["rel_b2"] = jnp.pad(b2, ((0, 0), (0, REL_OUT_PAD - NUM_REL)))                      # (1, 128)
    return fp


def span_pool_matrix(entity_spans, seq_len, e_pad):
    """(E_pad, S) normalized span-indicator matrix: pool @ ctx == per-span mean."""
    pos = jnp.arange(seq_len)
    rows = []
    for (s, e) in entity_spans:
        ind = ((pos >= s) & (pos <= e)).astype(jnp.float32)
        rows.append(ind / jnp.maximum(jnp.sum(ind), 1.0))
    m = jnp.stack(rows)
    return jnp.pad(m, ((0, e_pad - m.shape[0]), (0, 0)))


# ================================= forward ===================================
def forward(fused_params, sequence_output, attention_mask, entity_spans, gat_output, pairs):
    """Mirrors NERRelationModel.forward() hot path (eval-mode, one sample's relations).

    `fused_params` must be the output of fuse_params() built once at setup.
    """
    Bs, Ss, Hh = sequence_output.shape
    nE = len(entity_spans)
    P = pairs.shape[0]
    assert nE <= E_PAD and P <= P_PAD

    # wrapper glue: flatten batch, batch-0 mask, pooling matrix, pair features
    seq_flat = sequence_output.reshape(Bs * Ss, Hh)
    mask0 = attention_mask[0].reshape(1, Ss).astype(jnp.float32)
    pool = span_pool_matrix(entity_spans, Ss, E_PAD)
    # TODO(synk): GATConv layers not translated; `gat_output` is a synthetic stand-in for gat2(x).
    pair_feats = jnp.concatenate([gat_output[pairs[:, 0]], gat_output[pairs[:, 1]]], axis=-1)  # (P, 128)
    pair_pad = jnp.pad(pair_feats, ((0, P_PAD - P), (0, 0)))

    ner_pad, ent_pad, attn_pad, rel_pad = _fused_call(seq_flat, mask0, pool, pair_pad, fused_params)

    rel_logits = rel_pad[:P, :NUM_REL]                                   # (P, 6), one column per head
    return {
        "ner_logits": ner_pad[:, :NUM_BIOES_LABELS].reshape(Bs, Ss, NUM_BIOES_LABELS),
        "attended_entities": ent_pad[:nE, :Hh],
        "attn_weights": attn_pad[:nE, :Ss],
        "rel_logits": rel_logits,
        "rel_logits_by_type": {r: rel_logits[:, i:i + 1] for i, r in enumerate(RELATION_TYPES)},
    }


if __name__ == "__main__":
    key = jax.random.PRNGKey(0)
    k_seq, k_gat, k_param = jax.random.split(key, 3)

    params = init_params(k_param)
    fp = fuse_params(params)                 # one-time setup; fused/padded/bf16 weights live in HBM
    fp = jax.tree_util.tree_map(jax.block_until_ready, fp)

    # Synthetic stand-in for BERT last_hidden_state.  # TODO(synk): BERT encoder not translated.
    sequence_output = jax.random.normal(k_seq, (B, S, H), jnp.float32)
    attention_mask = jnp.concatenate(
        [jnp.ones((B, S - 3), jnp.float32), jnp.zeros((B, 3), jnp.float32)], axis=1)

    entity_spans = [(0, 2), (3, 4), (6, 9), (10, 12)]                    # E = 4 entities
    gat_output = jax.random.normal(k_gat, (E, GAT_OUT), jnp.float32)
    pairs = jnp.array([[0, 1], [1, 0], [2, 3], [3, 2]], jnp.int32)       # P = 4 valid pairs
    # TODO(synk): CRF loss and python-level positive/negative pair sampling not translated.

    out = forward(fp, sequence_output, attention_mask, entity_spans, gat_output, pairs)
    jax.block_until_ready(out)

    assert out["ner_logits"].shape == (B, S, NUM_BIOES_LABELS)
    assert out["attended_entities"].shape == (E, H)
    assert out["attn_weights"].shape == (E, S)
    assert out["rel_logits"].shape == (pairs.shape[0], NUM_REL)
    assert bool(jnp.all(jnp.isfinite(out["ner_logits"])))
    assert bool(jnp.all(jnp.isfinite(out["rel_logits"])))
    # masked positions must get ~zero attention weight
    assert float(jnp.max(out["attn_weights"][:, -3:])) < 1e-6

    print("KERNEL_OK")
</pallas_src>

<mosaic_0001>
module attributes {stable_mosaic.version = 11 : i64} {
  func.func @_fused_kernel(%arg0: memref<32x32xf32, #tpu.memory_space<vmem>>, %arg1: memref<1x16xf32, #tpu.memory_space<vmem>>, %arg2: memref<8x16xf32, #tpu.memory_space<vmem>>, %arg3: memref<8x128xf32, #tpu.memory_space<vmem>>, %arg4: memref<32x256xbf16, #tpu.memory_space<vmem>>, %arg5: memref<1x256xf32, #tpu.memory_space<vmem>>, %arg6: memref<256x128xbf16, #tpu.memory_space<vmem>>, %arg7: memref<1x128xf32, #tpu.memory_space<vmem>>, %arg8: memref<32x96xbf16, #tpu.memory_space<vmem>>, %arg9: memref<1x96xf32, #tpu.memory_space<vmem>>, %arg10: memref<1x32xf32, #tpu.memory_space<vmem>>, %arg11: memref<128x1536xbf16, #tpu.memory_space<vmem>>, %arg12: memref<1x1536xf32, #tpu.memory_space<vmem>>, %arg13: memref<6x1x256xf32, #tpu.memory_space<vmem>>, %arg14: memref<6x1x256xf32, #tpu.memory_space<vmem>>, %arg15: memref<6x1x256xf32, #tpu.memory_space<vmem>>, %arg16: memref<1x128xf32, #tpu.memory_space<vmem>>, %arg17: memref<32x128xf32, #tpu.memory_space<vmem>>, %arg18: memref<8x128xf32, #tpu.memory_space<vmem>>, %arg19: memref<8x128xf32, #tpu.memory_space<vmem>>, %arg20: memref<8x128xf32, #tpu.memory_space<vmem>>) attributes {dimension_semantics = [], scalar_prefetch = 0 : i64, scratch_operands = 0 : i64, tpu.core_type = #tpu.core_type<tc>} {
    %c0 = arith.constant 0 : index
    %c0_0 = arith.constant 0 : index
    %0 = vector.load %arg0[%c0, %c0_0] : memref<32x32xf32, #tpu.memory_space<vmem>>, vector<32x32xf32>
    %1 = arith.truncf %0 : vector<32x32xf32> to vector<32x32xbf16>
    %c0_1 = arith.constant 0 : index
    %c0_2 = arith.constant 0 : index
    %2 = vector.load %arg4[%c0_1, %c0_2] : memref<32x256xbf16, #tpu.memory_space<vmem>>, vector<32x256xbf16>
    %cst = arith.constant dense<0.000000e+00> : vector<32x256xf32>
    %3 = tpu.matmul %1, %2, %cst {dimension_numbers = #tpu.dot_dimension_numbers<[1], [0], [0], [1], [0, 0, 1, 1], [], []>} : vector<32x32xbf16>, vector<32x256xbf16>, vector<32x256xf32> -> vector<32x256xf32>
    %c0_3 = arith.constant 0 : index
    %c0_4 = arith.constant 0 : index
    %4 = vector.load %arg5[%c0_3, %c0_4] : memref<1x256xf32, #tpu.memory_space<vmem>>, vector<1x256xf32>
    %5 = vector.broadcast %4 : vector<1x256xf32> to vector<32x256xf32>
    %6 = arith.addf %3, %5 : vector<32x256xf32>
    %cst_5 = arith.constant 0.000000e+00 : f32
    %7 = vector.broadcast %cst_5 : f32 to vector<32x256xf32>
    %8 = arith.maximumf %6, %7 : vector<32x256xf32>
    %9 = arith.truncf %8 : vector<32x256xf32> to vector<32x256xbf16>
    %c0_6 = arith.constant 0 : index
    %c0_7 = arith.constant 0 : index
    %10 = vector.load %arg6[%c0_6, %c0_7] : memref<256x128xbf16, #tpu.memory_space<vmem>>, vector<256x128xbf16>
    %cst_8 = arith.constant dense<0.000000e+00> : vector<32x128xf32>
    %11 = tpu.matmul %9, %10, %cst_8 {dimension_numbers = #tpu.dot_dimension_numbers<[1], [0], [0], [1], [0, 0, 1, 1], [], []>} : vector<32x256xbf16>, vector<256x128xbf16>, vector<32x128xf32> -> vector<32x128xf32>
    %c0_9 = arith.constant 0 : index
    %c0_10 = arith.constant 0 : index
    %12 = vector.load %arg7[%c0_9, %c0_10] : memref<1x128xf32, #tpu.memory_space<vmem>>, vector<1x128xf32>
    %13 = vector.broadcast %12 : vector<1x128xf32> to vector<32x128xf32>
    %14 = arith.addf %11, %13 : vector<32x128xf32>
    %c0_11 = arith.constant 0 : index
    %c0_12 = arith.constant 0 : index
    %15 = vector.load %arg17[%c0_11, %c0_12] : memref<32x128xf32, #tpu.memory_space<vmem>>, vector<32x128xf32>
    tpu.vector_store %arg17[%c0_11, %c0_12], %14 {strides = array<i32>} : memref<32x128xf32, #tpu.memory_space<vmem>>, vector<32x128xf32>,
    %16 = vector.extract_strided_slice %0 {offsets = [0, 0], sizes = [16, 32], strides = [1, 1]} : vector<32x32xf32> to vector<16x32xf32>
    %c0_13 = arith.constant 0 : index
    %c0_14 = arith.constant 0 : index
    %17 = vector.load %arg2[%c0_13, %c0_14] : memref<8x16xf32, #tpu.memory_space<vmem>>, vector<8x16xf32>
    %cst_15 = arith.constant dense<0.000000e+00> : vector<8x32xf32>
    %18 = tpu.matmul %17, %16, %cst_15 {dimension_numbers = #tpu.dot_dimension_numbers<[1], [0], [0], [1], [0, 0, 1, 1], [], []>} : vector<8x16xf32>, vector<16x32xf32>, vector<8x32xf32> -> vector<8x32xf32>
    %19 = arith.truncf %16 : vector<16x32xf32> to vector<16x32xbf16>
    %c0_16 = arith.constant 0 : index
    %c0_17 = arith.constant 0 : index
    %20 = vector.load %arg8[%c0_16, %c0_17] : memref<32x96xbf16, #tpu.memory_space<vmem>>, vector<32x96xbf16>
    %cst_18 = arith.constant dense<0.000000e+00> : vector<16x96xf32>
    %21 = tpu.matmul %19, %20, %cst_18 {dimension_numbers = #tpu.dot_dimension_numbers<[1], [0], [0], [1], [0, 0, 1, 1], [], []>} : vector<16x32xbf16>, vector<32x96xbf16>, vector<16x96xf32> -> vector<16x96xf32>
    %c0_19 = arith.constant 0 : index
    %c0_20 = arith.constant 0 : index
    %22 = vector.load %arg9[%c0_19, %c0_20] : memref<1x96xf32, #tpu.memory_space<vmem>>, vector<1x96xf32>
    %23 = vector.broadcast %22 : vector<1x96xf32> to vector<16x96xf32>
    %24 = arith.addf %21, %23 : vector<16x96xf32>
    %25 = vector.extract_strided_slice %24 {offsets = [0, 0], sizes = [16, 32], strides = [1, 1]} : vector<16x96xf32> to vector<16x32xf32>
    %26 = vector.extract_strided_slice %24 {offsets = [0, 32], sizes = [16, 32], strides = [1, 1]} : vector<16x96xf32> to vector<16x32xf32>
    %27 = vector.extract_strided_slice %24 {offsets = [0, 64], sizes = [16, 32], strides = [1, 1]} : vector<16x96xf32> to vector<16x32xf32>
    %c0_21 = arith.constant 0 : index
    %c0_22 = arith.constant 0 : index
    %28 = vector.load %arg2[%c0_21, %c0_22] : memref<8x16xf32, #tpu.memory_space<vmem>>, vector<8x16xf32>
    %cst_23 = arith.constant dense<0.000000e+00> : vector<8x32xf32>
    %29 = tpu.matmul %28, %25, %cst_23 {dimension_numbers = #tpu.dot_dimension_numbers<[1], [0], [0], [1], [0, 0, 1, 1], [], []>} : vector<8x16xf32>, vector<16x32xf32>, vector<8x32xf32> -> vector<8x32xf32>
    %c0_24 = arith.constant 0 : index
    %c0_25 = arith.constant 0 : index
    %30 = vector.load %arg10[%c0_24, %c0_25] : memref<1x32xf32, #tpu.memory_space<vmem>>, vector<1x32xf32>
    %31 = vector.broadcast %30 : vector<1x32xf32> to vector<8x32xf32>
    %32 = arith.addf %29, %31 : vector<8x32xf32>
    %cst_26 = arith.constant dense<0.000000e+00> : vector<8x16xf32>
    %33 = tpu.matmul %32, %26, %cst_26 {dimension_numbers = #tpu.dot_dimension_numbers<[1], [1], [0], [0], [0, 0, 1, 0], [], []>} : vector<8x32xf32>, vector<16x32xf32>, vector<8x16xf32> -> vector<8x16xf32>
    %cst_27 = arith.constant 0.176776692 : f32
    %34 = vector.broadcast %cst_27 : f32 to vector<8x16xf32>
    %35 = arith.mulf %33, %34 : vector<8x16xf32>
    %c0_28 = arith.constant 0 : index
    %c0_29 = arith.constant 0 : index
    %36 = vector.load %arg1[%c0_28, %c0_29] : memref<1x16xf32, #tpu.memory_space<vmem>>, vector<1x16xf32>
    %cst_30 = arith.constant 5.000000e-01 : f32
    %37 = vector.broadcast %cst_30 : f32 to vector<1x16xf32>
    %38 = arith.cmpf olt, %36, %37 : vector<1x16xf32>
    %cst_31 = arith.constant -1.000000e+09 : f32
    %39 = vector.shape_cast %38 : vector<1x16xi1> to vector<1x16xi1>
    %40 = vector.broadcast %39 : vector<1x16xi1> to vector<8x16xi1>
    %41 = vector.broadcast %cst_31 : f32 to vector<8x16xf32>
    %42 = arith.select %40, %41, %35 : vector<8x16xi1>, vector<8x16xf32>
    %cst_32 = arith.constant dense<0xFF800000> : vector<8xf32>
    %43 = vector.multi_reduction <maximumf>, %42, %cst_32 [1] : vector<8x16xf32> to vector<8xf32>
    %44 = vector.shape_cast %43 : vector<8xf32> to vector<8x1xf32>
    %45 = vector.broadcast %44 : vector<8x1xf32> to vector<8x16xf32>
    %46 = arith.subf %42, %45 : vector<8x16xf32>
    %47 = math.exp %46 : vector<8x16xf32>
    %cst_33 = arith.constant dense<0.000000e+00> : vector<8xf32>
    %48 = vector.multi_reduction <add>, %47, %cst_33 [1] : vector<8x16xf32> to vector<8xf32>
    %49 = vector.shape_cast %48 : vector<8xf32> to vector<8x1xf32>
    %50 = tpu.reciprocal %49 {approx = true} : vector<8x1xf32> -> vector<8x1xf32>
    %51 = vector.broadcast %50 : vector<8x1xf32> to vector<8x16xf32>
    %52 = arith.mulf %47, %51 : vector<8x16xf32>
    %cst_34 = arith.constant 0.000000e+00 : f32
    %53 = vector.broadcast %cst_34 : f32 to vector<8x112xf32>
    %54 = tpu.concatenate %52, %53 in 1 : vector<8x16xf32>, vector<8x112xf32> -> vector<8x128xf32>
    %c0_35 = arith.constant 0 : index
    %c0_36 = arith.constant 0 : index
    %55 = vector.load %arg19[%c0_35, %c0_36] : memref<8x128xf32, #tpu.memory_space<vmem>>, vector<8x128xf32>
    tpu.vector_store %arg19[%c0_35, %c0_36], %54 {strides = array<i32>} : memref<8x128xf32, #tpu.memory_space<vmem>>, vector<8x128xf32>,
    %cst_37 = arith.constant dense<0.000000e+00> : vector<8x32xf32>
    %56 = tpu.matmul %52, %27, %cst_37 {dimension_numbers = #tpu.dot_dimension_numbers<[1], [0], [0], [1], [0, 0, 1, 1], [], []>} : vector<8x16xf32>, vector<16x32xf32>, vector<8x32xf32> -> vector<8x32xf32>
    %57 = arith.addf %18, %56 : vector<8x32xf32>
    %cst_38 = arith.constant 0.000000e+00 : f32
    %58 = vector.broadcast %cst_38 : f32 to vector<8x96xf32>
    %59 = tpu.concatenate %57, %58 in 1 : vector<8x32xf32>, vector<8x96xf32> -> vector<8x128xf32>
    %c0_39 = arith.constant 0 : index
    %c0_40 = arith.constant 0 : index
    %60 = vector.load %arg18[%c0_39, %c0_40] : memref<8x128xf32, #tpu.memory_space<vmem>>, vector<8x128xf32>
    tpu.vector_store %arg18[%c0_39, %c0_40], %59 {strides = array<i32>} : memref<8x128xf32, #tpu.memory_space<vmem>>, vector<8x128xf32>,
    %c0_41 = arith.constant 0 : index
    %c0_42 = arith.constant 0 : index
    %61 = vector.load %arg3[%c0_41, %c0_42] : memref<8x128xf32, #tpu.memory_space<vmem>>, vector<8x128xf32>
    %62 = arith.truncf %61 : vector<8x128xf32> to vector<8x128xbf16>
    %c0_43 = arith.constant 0 : index
    %c0_44 = arith.constant 0 : index
    %63 = vector.load %arg11[%c0_43, %c0_44] : memref<128x1536xbf16, #tpu.memory_space<vmem>>, vector<128x1536xbf16>
    %cst_45 = arith.constant dense<0.000000e+00> : vector<8x1536xf32>
    %64 = tpu.matmul %62, %63, %cst_45 {dimension_numbers = #tpu.dot_dimension_numbers<[1], [0], [0], [1], [0, 0, 1, 1], [], []>} : vector<8x128xbf16>, vector<128x1536xbf16>, vector<8x1536xf32> -> vector<8x1536xf32>
    %c0_46 = arith.constant 0 : index
    %c0_47 = arith.constant 0 : index
    %65 = vector.load %arg12[%c0_46, %c0_47] : memref<1x1536xf32, #tpu.memory_space<vmem>>, vector<1x1536xf32>
    %66 = vector.broadcast %65 : vector<1x1536xf32> to vector<8x1536xf32>
    %67 = arith.addf %64, %66 : vector<8x1536xf32>
    %68 = vector.extract_strided_slice %67 {offsets = [0, 0], sizes = [8, 256], strides = [1, 1]} : vector<8x1536xf32> to vector<8x256xf32>
    %cst_48 = arith.constant dense<0.000000e+00> : vector<8xf32>
    %69 = vector.multi_reduction <add>, %68, %cst_48 [1] : vector<8x256xf32> to vector<8xf32>
    %70 = vector.shape_cast %69 : vector<8xf32> to vector<8x1xf32>
    %cst_49 = arith.constant 3.906250e-03 : f32
    %71 = vector.broadcast %cst_49 : f32 to vector<8x1xf32>
    %72 = arith.mulf %70, %71 : vector<8x1xf32>
    %73 = arith.mulf %68, %68 : vector<8x256xf32>
    %cst_50 = arith.constant dense<0.000000e+00> : vector<8xf32>
    %74 = vector.multi_reduction <add>, %73, %cst_50 [1] : vector<8x256xf32> to vector<8xf32>
    %75 = vector.shape_cast %74 : vector<8xf32> to vector<8x1xf32>
    %cst_51 = arith.constant 3.906250e-03 : f32
    %76 = vector.broadcast %cst_51 : f32 to vector<8x1xf32>
    %77 = arith.mulf %75, %76 : vector<8x1xf32>
    %78 = arith.mulf %72, %72 : vector<8x1xf32>
    %79 = arith.subf %77, %78 : vector<8x1xf32>
    %80 = vector.broadcast %72 : vector<8x1xf32> to vector<8x256xf32>
    %81 = arith.subf %68, %80 : vector<8x256xf32>
    %cst_52 = arith.constant 9.99999974E-6 : f32
    %82 = vector.broadcast %cst_52 : f32 to vector<8x1xf32>
    %83 = arith.addf %79, %82 : vector<8x1xf32>
    %84 = math.rsqrt %83 : vector<8x1xf32>
    %85 = vector.broadcast %84 : vector<8x1xf32> to vector<8x256xf32>
    %86 = arith.mulf %81, %85 : vector<8x256xf32>
    %c0_53 = arith.constant 0 : index
    %c0_54 = arith.constant 0 : index
    %c0_55 = arith.constant 0 : index
    %87 = vector.load %arg13[%c0_53, %c0_54, %c0_55] : memref<6x1x256xf32, #tpu.memory_space<vmem>>, vector<1x1x256xf32>
    %88 = vector.shape_cast %87 : vector<1x1x256xf32> to vector<1x256xf32>
    %89 = vector.broadcast %88 : vector<1x256xf32> to vector<8x256xf32>
    %90 = arith.mulf %86, %89 : vector<8x256xf32>
    %c0_56 = arith.constant 0 : index
    %c0_57 = arith.constant 0 : index
    %c0_58 = arith.constant 0 : index
    %91 = vector.load %arg14[%c0_56, %c0_57, %c0_58] : memref<6x1x256xf32, #tpu.memory_space<vmem>>, vector<1x1x256xf32>
    %92 = vector.shape_cast %91 : vector<1x1x256xf32> to vector<1x256xf32>
    %93 = vector.broadcast %92 : vector<1x256xf32> to vector<8x256xf32>
    %94 = arith.addf %90, %93 : vector<8x256xf32>
    %cst_59 = arith.constant 0.000000e+00 : f32
    %95 = vector.broadcast %cst_59 : f32 to vector<8x256xf32>
    %96 = arith.maximumf %94, %95 : vector<8x256xf32>
    %c0_60 = arith.constant 0 : index
    %c0_61 = arith.constant 0 : index
    %c0_62 = arith.constant 0 : index
    %97 = vector.load %arg15[%c0_60, %c0_61, %c0_62] : memref<6x1x256xf32, #tpu.memory_space<vmem>>, vector<1x1x256xf32>
    %98 = vector.shape_cast %97 : vector<1x1x256xf32> to vector<1x256xf32>
    %99 = vector.broadcast %98 : vector<1x256xf32> to vector<8x256xf32>
    %100 = arith.mulf %96, %99 : vector<8x256xf32>
    %cst_63 = arith.constant dense<0.000000e+00> : vector<8xf32>
    %101 = vector.multi_reduction <add>, %100, %cst_63 [1] : vector<8x256xf32> to vector<8xf32>
    %102 = vector.shape_cast %101 : vector<8xf32> to vector<8x1xf32>
    %103 = vector.extract_strided_slice %67 {offsets = [0, 256], sizes = [8, 256], strides = [1, 1]} : vector<8x1536xf32> to vector<8x256xf32>
    %cst_64 = arith.constant dense<0.000000e+00> : vector<8xf32>
    %104 = vector.multi_reduction <add>, %103, %cst_64 [1] : vector<8x256xf32> to vector<8xf32>
    %105 = vector.shape_cast %104 : vector<8xf32> to vector<8x1xf32>
    %cst_65 = arith.constant 3.906250e-03 : f32
    %106 = vector.broadcast %cst_65 : f32 to vector<8x1xf32>
    %107 = arith.mulf %105, %106 : vector<8x1xf32>
    %108 = arith.mulf %103, %103 : vector<8x256xf32>
    %cst_66 = arith.constant dense<0.000000e+00> : vector<8xf32>
    %109 = vector.multi_reduction <add>, %108, %cst_66 [1] : vector<8x256xf32> to vector<8xf32>
    %110 = vector.shape_cast %109 : vector<8xf32> to vector<8x1xf32>
    %cst_67 = arith.constant 3.906250e-03 : f32
    %111 = vector.broadcast %cst_67 : f32 to vector<8x1xf32>
    %112 = arith.mulf %110, %111 : vector<8x1xf32>
    %113 = arith.mulf %107, %107 : vector<8x1xf32>
    %114 = arith.subf %112, %113 : vector<8x1xf32>
    %115 = vector.broadcast %107 : vector<8x1xf32> to vector<8x256xf32>
    %116 = arith.subf %103, %115 : vector<8x256xf32>
    %cst_68 = arith.constant 9.99999974E-6 : f32
    %117 = vector.broadcast %cst_68 : f32 to vector<8x1xf32>
    %118 = arith.addf %114, %117 : vector<8x1xf32>
    %119 = math.rsqrt %118 : vector<8x1xf32>
    %120 = vector.broadcast %119 : vector<8x1xf32> to vector<8x256xf32>
    %121 = arith.mulf %116, %120 : vector<8x256xf32>
    %c1 = arith.constant 1 : index
    %c0_69 = arith.constant 0 : index
    %c0_70 = arith.constant 0 : index
    %122 = vector.load %arg13[%c1, %c0_69, %c0_70] : memref<6x1x256xf32, #tpu.memory_space<vmem>>, vector<1x1x256xf32>
    %123 = vector.shape_cast %122 : vector<1x1x256xf32> to vector<1x256xf32>
    %124 = vector.broadcast %123 : vector<1x256xf32> to vector<8x256xf32>
    %125 = arith.mulf %121, %124 : vector<8x256xf32>
    %c1_71 = arith.constant 1 : index
    %c0_72 = arith.constant 0 : index
    %c0_73 = arith.constant 0 : index
    %126 = vector.load %arg14[%c1_71, %c0_72, %c0_73] : memref<6x1x256xf32, #tpu.memory_space<vmem>>, vector<1x1x256xf32>
    %127 = vector.shape_cast %126 : vector<1x1x256xf32> to vector<1x256xf32>
    %128 = vector.broadcast %127 : vector<1x256xf32> to vector<8x256xf32>
    %129 = arith.addf %125, %128 : vector<8x256xf32>
    %cst_74 = arith.constant 0.000000e+00 : f32
    %130 = vector.broadcast %cst_74 : f32 to vector<8x256xf32>
    %131 = arith.maximumf %129, %130 : vector<8x256xf32>
    %c1_75 = arith.constant 1 : index
    %c0_76 = arith.constant 0 : index
    %c0_77 = arith.constant 0 : index
    %132 = vector.load %arg15[%c1_75, %c0_76, %c0_77] : memref<6x1x256xf32, #tpu.memory_space<vmem>>, vector<1x1x256xf32>
    %133 = vector.shape_cast %132 : vector<1x1x256xf32> to vector<1x256xf32>
    %134 = vector.broadcast %133 : vector<1x256xf32> to vector<8x256xf32>
    %135 = arith.mulf %131, %134 : vector<8x256xf32>
    %cst_78 = arith.constant dense<0.000000e+00> : vector<8xf32>
    %136 = vector.multi_reduction <add>, %135, %cst_78 [1] : vector<8x256xf32> to vector<8xf32>
    %137 = vector.shape_cast %136 : vector<8xf32> to vector<8x1xf32>
    %138 = vector.extract_strided_slice %67 {offsets = [0, 512], sizes = [8, 256], strides = [1, 1]} : vector<8x1536xf32> to vector<8x256xf32>
    %cst_79 = arith.constant dense<0.000000e+00> : vector<8xf32>
    %139 = vector.multi_reduction <add>, %138, %cst_79 [1] : vector<8x256xf32> to vector<8xf32>
    %140 = vector.shape_cast %139 : vector<8xf32> to vector<8x1xf32>
    %cst_80 = arith.constant 3.906250e-03 : f32
    %141 = vector.broadcast %cst_80 : f32 to vector<8x1xf32>
    %142 = arith.mulf %140, %141 : vector<8x1xf32>
    %143 = arith.mulf %138, %138 : vector<8x256xf32>
    %cst_81 = arith.constant dense<0.000000e+00> : vector<8xf32>
    %144 = vector.multi_reduction <add>, %143, %cst_81 [1] : vector<8x256xf32> to vector<8xf32>
    %145 = vector.shape_cast %144 : vector<8xf32> to vector<8x1xf32>
    %cst_82 = arith.constant 3.906250e-03 : f32
    %146 = vector.broadcast %cst_82 : f32 to vector<8x1xf32>
    %147 = arith.mulf %145, %146 : vector<8x1xf32>
    %148 = arith.mulf %142, %142 : vector<8x1xf32>
    %149 = arith.subf %147, %148 : vector<8x1xf32>
    %150 = vector.broadcast %142 : vector<8x1xf32> to vector<8x256xf32>
    %151 = arith.subf %138, %150 : vector<8x256xf32>
    %cst_83 = arith.constant 9.99999974E-6 : f32
    %152 = vector.broadcast %cst_83 : f32 to vector<8x1xf32>
    %153 = arith.addf %149, %152 : vector<8x1xf32>
    %154 = math.rsqrt %153 : vector<8x1xf32>
    %155 = vector.broadcast %154 : vector<8x1xf32> to vector<8x256xf32>
    %156 = arith.mulf %151, %155 : vector<8x256xf32>
    %c2 = arith.constant 2 : index
    %c0_84 = arith.constant 0 : index
    %c0_85 = arith.constant 0 : index
    %157 = vector.load %arg13[%c2, %c0_84, %c0_85] : memref<6x1x256xf32, #tpu.memory_space<vmem>>, vector<1x1x256xf32>
    %158 = vector.shape_cast %157 : vector<1x1x256xf32> to vector<1x256xf32>
    %159 = vector.broadcast %158 : vector<1x256xf32> to vector<8x256xf32>
    %160 = arith.mulf %156, %159 : vector<8x256xf32>
    %c2_86 = arith.constant 2 : index
    %c0_87 = arith.constant 0 : index
    %c0_88 = arith.constant 0 : index
    %161 = vector.load %arg14[%c2_86, %c0_87, %c0_88] : memref<6x1x256xf32, #tpu.memory_space<vmem>>, vector<1x1x256xf32>
    %162 = vector.shape_cast %161 : vector<1x1x256xf32> to vector<1x256xf32>
    %163 = vector.broadcast %162 : vector<1x256xf32> to vector<8x256xf32>
    %164 = arith.addf %160, %163 : vector<8x256xf32>
    %cst_89 = arith.constant 0.000000e+00 : f32
    %165 = vector.broadcast %cst_89 : f32 to vector<8x256xf32>
    %166 = arith.maximumf %164, %165 : vector<8x256xf32>
    %c2_90 = arith.constant 2 : index
    %c0_91 = arith.constant 0 : index
    %c0_92 = arith.constant 0 : index
    %167 = vector.load %arg15[%c2_90, %c0_91, %c0_92] : memref<6x1x256xf32, #tpu.memory_space<vmem>>, vector<1x1x256xf32>
    %168 = vector.shape_cast %167 : vector<1x1x256xf32> to vector<1x256xf32>
    %169 = vector.broadcast %168 : vector<1x256xf32> to vector<8x256xf32>
    %170 = arith.mulf %166, %169 : vector<8x256xf32>
    %cst_93 = arith.constant dense<0.000000e+00> : vector<8xf32>
    %171 = vector.multi_reduction <add>, %170, %cst_93 [1] : vector<8x256xf32> to vector<8xf32>
    %172 = vector.shape_cast %171 : vector<8xf32> to vector<8x1xf32>
    %173 = vector.extract_strided_slice %67 {offsets = [0, 768], sizes = [8, 256], strides = [1, 1]} : vector<8x1536xf32> to vector<8x256xf32>
    %cst_94 = arith.constant dense<0.000000e+00> : vector<8xf32>
    %174 = vector.multi_reduction <add>, %173, %cst_94 [1] : vector<8x256xf32> to vector<8xf32>
    %175 = vector.shape_cast %174 : vector<8xf32> to vector<8x1xf32>
    %cst_95 = arith.constant 3.906250e-03 : f32
    %176 = vector.broadcast %cst_95 : f32 to vector<8x1xf32>
    %177 = arith.mulf %175, %176 : vector<8x1xf32>
    %178 = arith.mulf %173, %173 : vector<8x256xf32>
    %cst_96 = arith.constant dense<0.000000e+00> : vector<8xf32>
    %179 = vector.multi_reduction <add>, %178, %cst_96 [1] : vector<8x256xf32> to vector<8xf32>
    %180 = vector.shape_cast %179 : vector<8xf32> to vector<8x1xf32>
    %cst_97 = arith.constant 3.906250e-03 : f32
    %181 = vector.broadcast %cst_97 : f32 to vector<8x1xf32>
    %182 = arith.mulf %180, %181 : vector<8x1xf32>
    %183 = arith.mulf %177, %177 : vector<8x1xf32>
    %184 = arith.subf %182, %183 : vector<8x1xf32>
    %185 = vector.broadcast %177 : vector<8x1xf32> to vector<8x256xf32>
    %186 = arith.subf %173, %185 : vector<8x256xf32>
    %cst_98 = arith.constant 9.99999974E-6 : f32
    %187 = vector.broadcast %cst_98 : f32 to vector<8x1xf32>
    %188 = arith.addf %184, %187 : vector<8x1xf32>
    %189 = math.rsqrt %188 : vector<8x1xf32>
    %190 = vector.broadcast %189 : vector<8x1xf32> to vector<8x256xf32>
    %191 = arith.mulf %186, %190 : vector<8x256xf32>
    %c3 = arith.constant 3 : index
    %c0_99 = arith.constant 0 : index
    %c0_100 = arith.constant 0 : index
    %192 = vector.load %arg13[%c3, %c0_99, %c0_100] : memref<6x1x256xf32, #tpu.memory_space<vmem>>, vector<1x1x256xf32>
    %193 = vector.shape_cast %192 : vector<1x1x256xf32> to vector<1x256xf32>
    %194 = vector.broadcast %193 : vector<1x256xf32> to vector<8x256xf32>
    %195 = arith.mulf %191, %194 : vector<8x256xf32>
    %c3_101 = arith.constant 3 : index
    %c0_102 = arith.constant 0 : index
    %c0_103 = arith.constant 0 : index
    %196 = vector.load %arg14[%c3_101, %c0_102, %c0_103] : memref<6x1x256xf32, #tpu.memory_space<vmem>>, vector<1x1x256xf32>
    %197 = vector.shape_cast %196 : vector<1x1x256xf32> to vector<1x256xf32>
    %198 = vector.broadcast %197 : vector<1x256xf32> to vector<8x256xf32>
    %199 = arith.addf %195, %198 : vector<8x256xf32>
    %cst_104 = arith.constant 0.000000e+00 : f32
    %200 = vector.broadcast %cst_104 : f32 to vector<8x256xf32>
    %201 = arith.maximumf %199, %200 : vector<8x256xf32>
    %c3_105 = arith.constant 3 : index
    %c0_106 = arith.constant 0 : index
    %c0_107 = arith.constant 0 : index
    %202 = vector.load %arg15[%c3_105, %c0_106, %c0_107] : memref<6x1x256xf32, #tpu.memory_space<vmem>>, vector<1x1x256xf32>
    %203 = vector.shape_cast %202 : vector<1x1x256xf32> to vector<1x256xf32>
    %204 = vector.broadcast %203 : vector<1x256xf32> to vector<8x256xf32>
    %205 = arith.mulf %201, %204 : vector<8x256xf32>
    %cst_108 = arith.constant dense<0.000000e+00> : vector<8xf32>
    %206 = vector.multi_reduction <add>, %205, %cst_108 [1] : vector<8x256xf32> to vector<8xf32>
    %207 = vector.shape_cast %206 : vector<8xf32> to vector<8x1xf32>
    %208 = vector.extract_strided_slice %67 {offsets = [0, 1024], sizes = [8, 256], strides = [1, 1]} : vector<8x1536xf32> to vector<8x256xf32>
    %cst_109 = arith.constant dense<0.000000e+00> : vector<8xf32>
    %209 = vector.multi_reduction <add>, %208, %cst_109 [1] : vector<8x256xf32> to vector<8xf32>
    %210 = vector.shape_cast %209 : vector<8xf32> to vector<8x1xf32>
    %cst_110 = arith.constant 3.906250e-03 : f32
    %211 = vector.broadcast %cst_110 : f32 to vector<8x1xf32>
    %212 = arith.mulf %210, %211 : vector<8x1xf32>
    %213 = arith.mulf %208, %208 : vector<8x256xf32>
    %cst_111 = arith.constant dense<0.000000e+00> : vector<8xf32>
    %214 = vector.multi_reduction <add>, %213, %cst_111 [1] : vector<8x256xf32> to vector<8xf32>
    %215 = vector.shape_cast %214 : vector<8xf32> to vector<8x1xf32>
    %cst_112 = arith.constant 3.906250e-03 : f32
    %216 = vector.broadcast %cst_112 : f32 to vector<8x1xf32>
    %217 = arith.mulf %215, %216 : vector<8x1xf32>
    %218 = arith.mulf %212, %212 : vector<8x1xf32>
    %219 = arith.subf %217, %218 : vector<8x1xf32>
    %220 = vector.broadcast %212 : vector<8x1xf32> to vector<8x256xf32>
    %221 = arith.subf %208, %220 : vector<8x256xf32>
    %cst_113 = arith.constant 9.99999974E-6 : f32
    %222 = vector.broadcast %cst_113 : f32 to vector<8x1xf32>
    %223 = arith.addf %219, %222 : vector<8x1xf32>
    %224 = math.rsqrt %223 : vector<8x1xf32>
    %225 = vector.broadcast %224 : vector<8x1xf32> to vector<8x256xf32>
    %226 = arith.mulf %221, %225 : vector<8x256xf32>
    %c4 = arith.constant 4 : index
    %c0_114 = arith.constant 0 : index
    %c0_115 = arith.constant 0 : index
    %227 = vector.load %arg13[%c4, %c0_114, %c0_115] : memref<6x1x256xf32, #tpu.memory_space<vmem>>, vector<1x1x256xf32>
    %228 = vector.shape_cast %227 : vector<1x1x256xf32> to vector<1x256xf32>
    %229 = vector.broadcast %228 : vector<1x256xf32> to vector<8x256xf32>
    %230 = arith.mulf %226, %229 : vector<8x256xf32>
    %c4_116 = arith.constant 4 : index
    %c0_117 = arith.constant 0 : index
    %c0_118 = arith.constant 0 : index
    %231 = vector.load %arg14[%c4_116, %c0_117, %c0_118] : memref<6x1x256xf32, #tpu.memory_space<vmem>>, vector<1x1x256xf32>
    %232 = vector.shape_cast %231 : vector<1x1x256xf32> to vector<1x256xf32>
    %233 = vector.broadcast %232 : vector<1x256xf32> to vector<8x256xf32>
    %234 = arith.addf %230, %233 : vector<8x256xf32>
    %cst_119 = arith.constant 0.000000e+00 : f32
    %235 = vector.broadcast %cst_119 : f32 to vector<8x256xf32>
    %236 = arith.maximumf %234, %235 : vector<8x256xf32>
    %c4_120 = arith.constant 4 : index
    %c0_121 = arith.constant 0 : index
    %c0_122 = arith.constant 0 : index
    %237 = vector.load %arg15[%c4_120, %c0_121, %c0_122] : memref<6x1x256xf32, #tpu.memory_space<vmem>>, vector<1x1x256xf32>
    %238 = vector.shape_cast %237 : vector<1x1x256xf32> to vector<1x256xf32>
    %239 = vector.broadcast %238 : vector<1x256xf32> to vector<8x256xf32>
    %240 = arith.mulf %236, %239 : vector<8x256xf32>
    %cst_123 = arith.constant dense<0.000000e+00> : vector<8xf32>
    %241 = vector.multi_reduction <add>, %240, %cst_123 [1] : vector<8x256xf32> to vector<8xf32>
    %242 = vector.shape_cast %241 : vector<8xf32> to vector<8x1xf32>
    %243 = vector.extract_strided_slice %67 {offsets = [0, 1280], sizes = [8, 256], strides = [1, 1]} : vector<8x1536xf32> to vector<8x256xf32>
    %cst_124 = arith.constant dense<0.000000e+00> : vector<8xf32>
    %244 = vector.multi_reduction <add>, %243, %cst_124 [1] : vector<8x256xf32> to vector<8xf32>
    %245 = vector.shape_cast %244 : vector<8xf32> to vector<8x1xf32>
    %cst_125 = arith.constant 3.906250e-03 : f32
    %246 = vector.broadcast %cst_125 : f32 to vector<8x1xf32>
    %247 = arith.mulf %245, %246 : vector<8x1xf32>
    %248 = arith.mulf %243, %243 : vector<8x256xf32>
    %cst_126 = arith.constant dense<0.000000e+00> : vector<8xf32>
    %249 = vector.multi_reduction <add>, %248, %cst_126 [1] : vector<8x256xf32> to vector<8xf32>
    %250 = vector.shape_cast %249 : vector<8xf32> to vector<8x1xf32>
    %cst_127 = arith.constant 3.906250e-03 : f32
    %251 = vector.broadcast %cst_127 : f32 to vector<8x1xf32>
    %252 = arith.mulf %250, %251 : vector<8x1xf32>
    %253 = arith.mulf %247, %247 : vector<8x1xf32>
    %254 = arith.subf %252, %253 : vector<8x1xf32>
    %255 = vector.broadcast %247 : vector<8x1xf32> to vector<8x256xf32>
    %256 = arith.subf %243, %255 : vector<8x256xf32>
    %cst_128 = arith.constant 9.99999974E-6 : f32
    %257 = vector.broadcast %cst_128 : f32 to vector<8x1xf32>
    %258 = arith.addf %254, %257 : vector<8x1xf32>
    %259 = math.rsqrt %258 : vector<8x1xf32>
    %260 = vector.broadcast %259 : vector<8x1xf32> to vector<8x256xf32>
    %261 = arith.mulf %256, %260 : vector<8x256xf32>
    %c5 = arith.constant 5 : index
    %c0_129 = arith.constant 0 : index
    %c0_130 = arith.constant 0 : index
    %262 = vector.load %arg13[%c5, %c0_129, %c0_130] : memref<6x1x256xf32, #tpu.memory_space<vmem>>, vector<1x1x256xf32>
    %263 = vector.shape_cast %262 : vector<1x1x256xf32> to vector<1x256xf32>
    %264 = vector.broadcast %263 : vector<1x256xf32> to vector<8x256xf32>
    %265 = arith.mulf %261, %264 : vector<8x256xf32>
    %c5_131 = arith.constant 5 : index
    %c0_132 = arith.constant 0 : index
    %c0_133 = arith.constant 0 : index
    %266 = vector.load %arg14[%c5_131, %c0_132, %c0_133] : memref<6x1x256xf32, #tpu.memory_space<vmem>>, vector<1x1x256xf32>
    %267 = vector.shape_cast %266 : vector<1x1x256xf32> to vector<1x256xf32>
    %268 = vector.broadcast %267 : vector<1x256xf32> to vector<8x256xf32>
    %269 = arith.addf %265, %268 : vector<8x256xf32>
    %cst_134 = arith.constant 0.000000e+00 : f32
    %270 = vector.broadcast %cst_134 : f32 to vector<8x256xf32>
    %271 = arith.maximumf %269, %270 : vector<8x256xf32>
    %c5_135 = arith.constant 5 : index
    %c0_136 = arith.constant 0 : index
    %c0_137 = arith.constant 0 : index
    %272 = vector.load %arg15[%c5_135, %c0_136, %c0_137] : memref<6x1x256xf32, #tpu.memory_space<vmem>>, vector<1x1x256xf32>
    %273 = vector.shape_cast %272 : vector<1x1x256xf32> to vector<1x256xf32>
    %274 = vector.broadcast %273 : vector<1x256xf32> to vector<8x256xf32>
    %275 = arith.mulf %271, %274 : vector<8x256xf32>
    %cst_138 = arith.constant dense<0.000000e+00> : vector<8xf32>
    %276 = vector.multi_reduction <add>, %275, %cst_138 [1] : vector<8x256xf32> to vector<8xf32>
    %277 = vector.shape_cast %276 : vector<8xf32> to vector<8x1xf32>
    %278 = tpu.concatenate %102, %137, %172, %207, %242, %277 in 1 : vector<8x1xf32>, vector<8x1xf32>, vector<8x1xf32>, vector<8x1xf32>, vector<8x1xf32>, vector<8x1xf32> -> vector<8x6xf32>
    %cst_139 = arith.constant 0.000000e+00 : f32
    %279 = vector.broadcast %cst_139 : f32 to vector<8x122xf32>
    %280 = tpu.concatenate %278, %279 in 1 : vector<8x6xf32>, vector<8x122xf32> -> vector<8x128xf32>
    %c0_140 = arith.constant 0 : index
    %c0_141 = arith.constant 0 : index
    %281 = vector.load %arg16[%c0_140, %c0_141] : memref<1x128xf32, #tpu.memory_space<vmem>>, vector<1x128xf32>
    %282 = vector.broadcast %281 : vector<1x128xf32> to vector<8x128xf32>
    %283 = arith.addf %280, %282 : vector<8x128xf32>
    %c0_142 = arith.constant 0 : index
    %c0_143 = arith.constant 0 : index
    %284 = vector.load %arg20[%c0_142, %c0_143] : memref<8x128xf32, #tpu.memory_space<vmem>>, vector<8x128xf32>
    tpu.vector_store %arg20[%c0_142, %c0_143], %283 {strides = array<i32>} : memref<8x128xf32, #tpu.memory_space<vmem>>, vector<8x128xf32>,
    return
  }
}

</mosaic_0001>

<bundles_post_ra>
// kernel: tpu_custom_call.1
= control target key start
LH: loop header
LB: loop body
LE: loop exit
PB: predicated region body
PF: predicated region fallthrough
CT: control target
= control target key end

     0   :  { %s3706_s0 = inlined_call_operand.hbm [shape: f32[32,32], index: 0, kind: input, shape index: {}]   ;;  %s3707_s1 = inlined_call_operand.vmem [shape: f32[1,16], index: 1, kind: input, shape index: {}]   ;;  %s3708_s2 = inlined_call_operand.hbm [shape: f32[8,16], index: 2, kind: input, shape index: {}]   ;;  %s3709_s3 = inlined_call_operand.hbm [shape: f32[8,128], index: 3, kind: input, shape index: {}]   ;;  %s3710_s4 = inlined_call_operand.hbm [shape: bf16[32,256], index: 4, kind: input, shape index: {}]   ;;  %s3711_s5 = inlined_call_operand.hbm [shape: f32[1,256], index: 5, kind: input, shape index: {}]   ;;  %s3712_s6 = inlined_call_operand.hbm [shape: bf16[256,128], index: 6, kind: input, shape index: {}]   ;;  %s3713_s7 = inlined_call_operand.hbm [shape: f32[1,128], index: 7, kind: input, shape index: {}]   ;;  %s3714_s8 = inlined_call_operand.vmem [shape: bf16[32,96], index: 8, kind: input, shape index: {}]   ;;  %s3715_s9 = inlined_call_operand.hbm [shape: f32[1,96], index: 9, kind: input, shape index: {}]   ;;  %s3716_s10 = inlined_call_operand.hbm [shape: f32[1,32], index: 10, kind: input, shape index: {}]   ;;  %s3717_s11 = inlined_call_operand.hbm [shape: bf16[128,1536], index: 11, kind: input, shape index: {}]   ;;  %s3718_s12 = inlined_call_operand.vmem [shape: f32[1,1536], index: 12, kind: input, shape index: {}]   ;;  %s3719_s13 = inlined_call_operand.vmem [shape: f32[6,1,256], index: 13, kind: input, shape index: {}]   ;;  %s3720_s14 = inlined_call_operand.vmem [shape: f32[6,1,256], index: 14, kind: input, shape index: {}]   ;;  %s3721_s15 = inlined_call_operand.hbm [shape: f32[6,1,256], index: 15, kind: input, shape index: {}]   ;;  %s3722_s16 = inlined_call_operand.vmem [shape: f32[1,128], index: 16, kind: input, shape index: {}]   ;;  %s3723_s17 = inlined_call_operand.hbm [shape: f32[32,128], index: 17, kind: output, shape index: {0}]   ;;  %s3724_s18 = inlined_call_operand.hbm [shape: f32[8,128], index: 18, kind: output, shape index: {1}]   ;;  %s3725_s19 = inlined_call_operand.hbm [shape: f32[8,128], index: 19, kind: output, shape index: {2}]   ;;  %s3726_s20 = inlined_call_operand.hbm [shape: f32[8,128], index: 20, kind: output, shape index: {3}]  }
   0x1   :  { %3736 = sst [smem:[#allocation35_spill]] %s3706_s0 }
   0x2   :  { %3737 = sst [smem:[#allocation36_spill]] %s3707_s1 }
   0x3   :  { %3738 = sst [smem:[#allocation37_spill]] %s3708_s2 }
   0x4   :  { %3739 = sst [smem:[#allocation38_spill]] %s3709_s3 }
   0x5   :  { %3740 = sst [smem:[#allocation39_spill]] %s3710_s4 }
   0x6   :  { %3741 = sst [smem:[#allocation40_spill]] %s3726_s20 }
   0x7   :  { %26 = vsyncpa [#allocation3], 0 }
   0x8   :  { %27 = vsyncpa [#allocation6], 0 }
   0x9   :  { %28 = vsyncpa [#allocation9], 0 }
   0xa   :  { %29 = vsyncpa [#allocation12], 0 }
   0xb   :  { %30 = vsyncpa [#allocation15], 0 }
   0xc   :  { %31 = vsyncpa [#allocation18], 0 }
   0xd   :  { %32 = vsyncpa [#allocation4], 0 }
   0xe   :  { %33 = vsyncpa [#allocation22], 0 }
   0xf   :  { %34 = vsyncpa [#allocation25], 0  ;;  %s3088_s1 = smov [#allocation5]   ;;  %s3742_s2 = sld [smem:[#allocation37_spill]] }
  0x10   :  { %s55_s22 = sshll.u32 %s3088_s1, 4  ;;  %s56_s22 = int_to_ptr.vmem [resolvable:$true] %s55_s22 }
  0x15   :  { %s2740_s25 = scalar_lea.hbm %s3742_s2, 128 }
  0x16   :  { %p2741_p0 = scmp.ne.s32.totalorder %s3742_s2, %s2740_s25  ;;  %p2744_p1 = scmp.lt.u32.totalorder %s2740_s25, %s3742_s2 }
  0x18   :  { %p2746_p2 = pnand %p2744_p1, %p2741_p0 }
  0x1a   :  { %2749 = shalt.err (!%p2746_p2)
}
  0x1b   :  { %s2750_s4 = scalar_lea.vmem %s56_s22, 128  ;;  %p2755_p4 = scmp.lt.s32.totalorder %s56_s22, %s56_s22 }
  0x1c   :  { %p2751_p3 = scmp.ne.s32.totalorder %s56_s22, %s2750_s4  ;;  %p2756_p5 = scmp.lt.s32.totalorder %s2750_s4, %s2750_s4 }
  0x1e   :  { %p2757_p6 = por %p2756_p5, %p2755_p4 }
  0x20   :  { %p2758_p7 = pnand %p2757_p6, %p2751_p3 }
  0x22   :  { %2761 = shalt.err (!%p2758_p7)
}
  0x23   :  { %58 = dma.hbm_to_vmem [thread:$0]  %s3742_s2, 128, %s56_s22, [#allocation6]  }
  0x24   :  { %s3089_s0 = smov [#allocation8]   ;;  %s3090_s1 = smov [#allocation11]  }
  0x25   :  { %s74_s21 = sshll.u32 %s3089_s0, 4  ;;  %s96_s23 = sshll.u32 %s3090_s1, 4  ;;  %s75_s21 = int_to_ptr.vmem [resolvable:$true] %s74_s21  ;;  %s97_s23 = int_to_ptr.vmem [resolvable:$true] %s96_s23 }
  0x26   :  { %s3743_s3 = sld [smem:[#allocation39_spill]] }
  0x2c   :  { %s2762_s26 = scalar_lea.hbm %s3743_s3, 512 }
  0x2d   :  { %p2763_p8 = scmp.ne.s32.totalorder %s3743_s3, %s2762_s26  ;;  %p2766_p9 = scmp.lt.u32.totalorder %s2762_s26, %s3743_s3 }
  0x2f   :  { %p2768_p10 = pnand %p2766_p9, %p2763_p8 }
  0x31   :  { %2771 = shalt.err (!%p2768_p10)
}
  0x32   :  { %s2772_s22 = scalar_lea.vmem %s75_s21, 512  ;;  %p2777_p12 = scmp.lt.s32.totalorder %s75_s21, %s75_s21 }
  0x33   :  { %p2773_p11 = scmp.ne.s32.totalorder %s75_s21, %s2772_s22  ;;  %p2778_p13 = scmp.lt.s32.totalorder %s2772_s22, %s2772_s22 }
  0x35   :  { %p2779_p0 = por %p2778_p13, %p2777_p12 }
  0x37   :  { %p2780_p1 = pnand %p2779_p0, %p2773_p11 }
  0x39   :  { %2783 = shalt.err (!%p2780_p1)
}
  0x3a   :  { %s3732_s2 = smov 128   ;;  %s3734_s29 = smov 8  }
  0x3b   :  { %80 = dma.hbm_to_vmem [thread:$0]  %s3743_s3, 512, %s75_s21, [#allocation9], %s3732_s2, %s3732_s2, %s3734_s29  }
  0x3c   :  { %s2784_s24 = scalar_lea.hbm %s3712_s6, 2048 }
  0x3d   :  { %p2785_p2 = scmp.ne.s32.totalorder %s3712_s6, %s2784_s24  ;;  %p2788_p3 = scmp.lt.u32.totalorder %s2784_s24, %s3712_s6 }
  0x3f   :  { %p2790_p4 = pnand %p2788_p3, %p2785_p2 }
  0x41   :  { %2793 = shalt.err (!%p2790_p4)
}
  0x42   :  { %s2794_s4 = scalar_lea.vmem %s97_s23, 2048  ;;  %p2799_p6 = scmp.lt.s32.totalorder %s97_s23, %s97_s23 }
  0x43   :  { %p2795_p5 = scmp.ne.s32.totalorder %s97_s23, %s2794_s4  ;;  %p2800_p7 = scmp.lt.s32.totalorder %s2794_s4, %s2794_s4 }
  0x45   :  { %p2801_p8 = por %p2800_p7, %p2799_p6 }
  0x47   :  { %p2802_p9 = pnand %p2801_p8, %p2795_p5 }
  0x49   :  { %2805 = shalt.err (!%p2802_p9)
}
  0x4a   :  { %s3093_s21 = smov 64   ;;  %s3094_s3 = smov 4  }
  0x4b   :  { %102 = dma.hbm_to_vmem [thread:$0]  %s3712_s6, 2048, %s97_s23, [#allocation12], %s3093_s21, %s3093_s21, %s3094_s3  }
  0x4c   :  { %s3095_s0 = smov [#allocation14]   ;;  %s3096_s1 = smov [#allocation17]  }
  0x4d   :  { %s121_s20 = sshll.u32 %s3095_s0, 4  ;;  %s140_s24 = sshll.u32 %s3096_s1, 4  ;;  %s122_s20 = int_to_ptr.vmem [resolvable:$true] %s121_s20  ;;  %s141_s24 = int_to_ptr.vmem [resolvable:$true] %s140_s24 }
  0x4e   :  { %s2806_s27 = scalar_lea.hbm %s3715_s9, 16 }
  0x4f   :  { %p2807_p10 = scmp.ne.s32.totalorder %s3715_s9, %s2806_s27  ;;  %p2810_p11 = scmp.lt.u32.totalorder %s2806_s27, %s3715_s9 }
  0x51   :  { %p2812_p12 = pnand %p2810_p11, %p2807_p10 }
  0x53   :  { %2815 = shalt.err (!%p2812_p12)
}
  0x54   :  { %s2816_s6 = scalar_lea.vmem %s122_s20, 16  ;;  %s2820_s23 = scalar_lea.vmem %s122_s20, 32 }
  0x55   :  { %p2817_p13 = scmp.ne.s32.totalorder %s122_s20, %s2816_s6  ;;  %p2821_p0 = scmp.lt.s32.totalorder %s122_s20, %s122_s20 }
  0x56   :  { %p2822_p1 = scmp.lt.s32.totalorder %s2820_s23, %s2816_s6 }
  0x58   :  { %p2823_p2 = por %p2822_p1, %p2821_p0 }
  0x5a   :  { %p2824_p3 = pnand %p2823_p2, %p2817_p13 }
  0x5c   :  { %2827 = shalt.err (!%p2824_p3)
}
  0x5d   :  { %124 = dma.hbm_to_vmem [thread:$0]  %s3715_s9, 16, %s122_s20, [#allocation15]  }
  0x5e   :  { %s2828_s2 = scalar_lea.hbm %s3717_s11, 12288 }
  0x5f   :  { %p2829_p4 = scmp.ne.s32.totalorder %s3717_s11, %s2828_s2  ;;  %p2832_p5 = scmp.lt.u32.totalorder %s2828_s2, %s3717_s11 }
  0x61   :  { %p2834_p6 = pnand %p2832_p5, %p2829_p4 }
  0x63   :  { %2837 = shalt.err (!%p2834_p6)
}
  0x64   :  { %s2838_s27 = scalar_lea.vmem %s141_s24, 12288  ;;  %p2843_p8 = scmp.lt.s32.totalorder %s141_s24, %s141_s24 }
  0x65   :  { %p2839_p7 = scmp.ne.s32.totalorder %s141_s24, %s2838_s27  ;;  %p2844_p9 = scmp.lt.s32.totalorder %s2838_s27, %s2838_s27 }
  0x67   :  { %p2845_p10 = por %p2844_p9, %p2843_p8 }
  0x69   :  { %p2846_p11 = pnand %p2845_p10, %p2839_p7 }
  0x6b   :  { %2849 = shalt.err (!%p2846_p11)
}
  0x6c   :  { %s3097_s9 = smov 768   ;;  %s3098_s20 = smov 48  }
  0x6d   :  { %146 = dma.hbm_to_vmem [thread:$0]  %s3717_s11, 12288, %s141_s24, [#allocation18], %s3097_s9, %s3097_s9, %s3098_s20  }
  0x6e   :  { %s3099_s6 = smov [#allocation2]   ;;  %s3100_s3 = smov [#allocation7]  }
  0x6f   :  { %s40_s23 = sshll.u32 %s3099_s6, 4  ;;  %s65_s22 = sshll.u32 %s3100_s3, 4  ;;  %s41_s23 = int_to_ptr.vmem [resolvable:$true] %s40_s23  ;;  %s66_s22 = int_to_ptr.vmem [resolvable:$true] %s65_s22 }
  0x70   :  { %s3744_s2 = sld [smem:[#allocation35_spill]] }
  0x76   :  { %s2850_s29 = scalar_lea.hbm %s3744_s2, 512 }
  0x77   :  { %p2851_p12 = scmp.ne.s32.totalorder %s3744_s2, %s2850_s29  ;;  %p2854_p13 = scmp.lt.u32.totalorder %s2850_s29, %s3744_s2 }
  0x79   :  { %p2856_p0 = pnand %p2854_p13, %p2851_p12 }
  0x7b   :  { %2859 = shalt.err (!%p2856_p0)
}
  0x7c   :  { %s2860_s11 = scalar_lea.vmem %s41_s23, 512  ;;  %p2865_p2 = scmp.lt.s32.totalorder %s41_s23, %s41_s23 }
  0x7d   :  { %p2861_p1 = scmp.ne.s32.totalorder %s41_s23, %s2860_s11  ;;  %p2866_p3 = scmp.lt.s32.totalorder %s2860_s11, %s2860_s11 }
  0x7f   :  { %p2867_p4 = por %p2866_p3, %p2865_p2 }
  0x81   :  { %p2868_p5 = pnand %p2867_p4, %p2861_p1 }
  0x83   :  { %2871 = shalt.err (!%p2868_p5)
}
  0x84   :  { %s3745_s24 = smov 8   ;;  %s3746_s9 = smov 128  }
  0x85   :  { %46 = dma.hbm_to_vmem [thread:$0]  %s3744_s2, 512, %s41_s23, [#allocation3], %s3746_s9, %s3746_s9, %s3745_s24  }
  0x86   :  { %s3747_s3 = sld [smem:[#allocation38_spill]] }
  0x8c   :  { %s2872_s30 = scalar_lea.hbm %s3747_s3, 128 }
  0x8d   :  { %p2873_p6 = scmp.ne.s32.totalorder %s3747_s3, %s2872_s30  ;;  %p2876_p7 = scmp.lt.u32.totalorder %s2872_s30, %s3747_s3 }
  0x8f   :  { %p2878_p8 = pnand %p2876_p7, %p2873_p6 }
  0x91   :  { %2881 = shalt.err (!%p2878_p8)
}
  0x92   :  { %s2882_s26 = scalar_lea.vmem %s66_s22, 128  ;;  %p2887_p10 = scmp.lt.s32.totalorder %s66_s22, %s66_s22 }
  0x93   :  { %p2883_p9 = scmp.ne.s32.totalorder %s66_s22, %s2882_s26  ;;  %p2888_p11 = scmp.lt.s32.totalorder %s2882_s26, %s2882_s26 }
  0x95   :  { %p2889_p12 = por %p2888_p11, %p2887_p10 }
  0x97   :  { %p2890_p13 = pnand %p2889_p12, %p2883_p9 }
  0x99   :  { %2893 = shalt.err (!%p2890_p13)
}
  0x9a   :  { %68 = dma.hbm_to_vmem [thread:$0]  %s3747_s3, 128, %s66_s22, [#allocation6]  }
  0x9b   :  { %s3101_s27 = smov [#allocation10]   ;;  %s3102_s20 = smov [#allocation13]  }
  0x9c   :  { %s87_s11 = sshll.u32 %s3101_s27, 4  ;;  %s109_s28 = sshll.u32 %s3102_s20, 4  ;;  %s88_s11 = int_to_ptr.vmem [resolvable:$true] %s87_s11  ;;  %s110_s28 = int_to_ptr.vmem [resolvable:$true] %s109_s28 }
  0x9d   :  { %s2894_s30 = scalar_lea.hbm %s3711_s5, 32 }
  0x9e   :  { %p2895_p0 = scmp.ne.s32.totalorder %s3711_s5, %s2894_s30  ;;  %p2898_p1 = scmp.lt.u32.totalorder %s2894_s30, %s3711_s5 }
  0xa0   :  { %p2900_p2 = pnand %p2898_p1, %p2895_p0 }
  0xa2   :  { %2903 = shalt.err (!%p2900_p2)
}
  0xa3   :  { %s2904_s22 = scalar_lea.vmem %s88_s11, 32  ;;  %p2909_p4 = scmp.lt.s32.totalorder %s88_s11, %s88_s11 }
  0xa4   :  { %p2905_p3 = scmp.ne.s32.totalorder %s88_s11, %s2904_s22  ;;  %p2910_p5 = scmp.lt.s32.totalorder %s2904_s22, %s2904_s22 }
  0xa6   :  { %p2911_p6 = por %p2910_p5, %p2909_p4 }
  0xa8   :  { %p2912_p7 = pnand %p2911_p6, %p2905_p3 }
  0xaa   :  { %2915 = shalt.err (!%p2912_p7)
}
  0xab   :  { %90 = dma.hbm_to_vmem [thread:$0]  %s3711_s5, 32, %s88_s11, [#allocation9]  }
  0xac   :  { %s2916_s27 = scalar_lea.hbm %s3713_s7, 16 }
  0xad   :  { %p2917_p8 = scmp.ne.s32.totalorder %s3713_s7, %s2916_s27  ;;  %p2920_p9 = scmp.lt.u32.totalorder %s2916_s27, %s3713_s7 }
  0xaf   :  { %p2922_p10 = pnand %p2920_p9, %p2917_p8 }
  0xb1   :  { %2925 = shalt.err (!%p2922_p10)
}
  0xb2   :  { %s2926_s0 = scalar_lea.vmem %s110_s28, 16  ;;  %s2930_s29 = scalar_lea.vmem %s110_s28, 32 }
  0xb3   :  { %p2927_p11 = scmp.ne.s32.totalorder %s110_s28, %s2926_s0  ;;  %p2931_p12 = scmp.lt.s32.totalorder %s110_s28, %s110_s28 }
  0xb4   :  { %p2932_p13 = scmp.lt.s32.totalorder %s2930_s29, %s2926_s0 }
  0xb6   :  { %p2933_p0 = por %p2932_p13, %p2931_p12 }
  0xb8   :  { %p2934_p1 = pnand %p2933_p0, %p2927_p11 }
  0xba   :  { %2937 = shalt.err (!%p2934_p1)
}
  0xbb   :  { %112 = dma.hbm_to_vmem [thread:$0]  %s3713_s7, 16, %s110_s28, [#allocation12]  }
  0xbc   :  { %s3103_s1 = smov [#allocation16]   ;;  %s3104_s22 = smov [#allocation19]  }
  0xbd   :  { %s131_s25 = sshll.u32 %s3103_s1, 4  ;;  %s158_s3 = sshll.u32 %s3104_s22, 4  ;;  %s132_s25 = int_to_ptr.vmem [resolvable:$true] %s131_s25  ;;  %s159_s3 = int_to_ptr.vmem [resolvable:$true] %s158_s3 }
  0xbe   :  { %s2938_s2 = scalar_lea.hbm %s3716_s10, 16 }
  0xbf   :  { %p2939_p2 = scmp.ne.s32.totalorder %s3716_s10, %s2938_s2  ;;  %p2942_p3 = scmp.lt.u32.totalorder %s2938_s2, %s3716_s10 }
  0xc1   :  { %p2944_p4 = pnand %p2942_p3, %p2939_p2 }
  0xc3   :  { %2947 = shalt.err (!%p2944_p4)
}
  0xc4   :  { %s2948_s7 = scalar_lea.vmem %s132_s25, 16  ;;  %s2952_s28 = scalar_lea.vmem %s132_s25, 32 }
  0xc5   :  { %p2949_p5 = scmp.ne.s32.totalorder %s132_s25, %s2948_s7  ;;  %p2953_p6 = scmp.lt.s32.totalorder %s132_s25, %s132_s25 }
  0xc6   :  { %p2954_p7 = scmp.lt.s32.totalorder %s2952_s28, %s2948_s7 }
  0xc8   :  { %p2955_p8 = por %p2954_p7, %p2953_p6 }
  0xca   :  { %p2956_p9 = pnand %p2955_p8, %p2949_p5 }
  0xcc   :  { %2959 = shalt.err (!%p2956_p9)
}
  0xcd   :  { %134 = dma.hbm_to_vmem [thread:$0]  %s3716_s10, 16, %s132_s25, [#allocation15]  }
  0xce   :  { %s2960_s11 = scalar_lea.hbm %s3721_s15, 192 }
  0xcf   :  { %p2961_p10 = scmp.ne.s32.totalorder %s3721_s15, %s2960_s11  ;;  %p2964_p11 = scmp.lt.u32.totalorder %s2960_s11, %s3721_s15 }
  0xd1   :  { %p2966_p12 = pnand %p2964_p11, %p2961_p10 }
  0xd3   :  { %2969 = shalt.err (!%p2966_p12)
}
  0xd4   :  { %s2970_s2 = scalar_lea.vmem %s159_s3, 192  ;;  %p2975_p0 = scmp.lt.s32.totalorder %s159_s3, %s159_s3 }
  0xd5   :  { %p2971_p13 = scmp.ne.s32.totalorder %s159_s3, %s2970_s2  ;;  %p2976_p1 = scmp.lt.s32.totalorder %s2970_s2, %s2970_s2 }
  0xd7   :  { %p2977_p2 = por %p2976_p1, %p2975_p0 }
  0xd9   :  { %p2978_p3 = pnand %p2977_p2, %p2971_p13 }
  0xdb   :  { %2981 = shalt.err (!%p2978_p3)
}
  0xdc   :  { %s3105_s10 = smov 32   ;;  %s3106_s25 = smov 2  }
  0xdd   :  { %164 = dma.hbm_to_vmem [thread:$0]  %s3721_s15, 192, %s159_s3, [#allocation18], %s3105_s10, %s3105_s10, %s3106_s25  }
  0xde   :  { %3070 = dma.done.wait [#allocation3], 512  }
  0xdf   :  { %3071 = vsyncadd [#allocation3], 4294966784 }
  0xe0   :  { %3072 = dma.done.wait [#allocation6], 256  }
  0xe1   :  { %3073 = vsyncadd [#allocation6], 4294967040 }
  0xe2   :  { %3074 = dma.done.wait [#allocation9], 544  }
  0xe3   :  { %3075 = vsyncadd [#allocation9], 4294966752 }
  0xe4   :  { %3076 = dma.done.wait [#allocation12], 2064  }
  0xe5   :  { %3077 = vsyncadd [#allocation12], 4294965232 }
  0xe6   :  { %3078 = dma.done.wait [#allocation15], 32  }
  0xe7   :  { %3079 = vsyncadd [#allocation15], 4294967264 }
  0xe8   :  { %3080 = dma.done.wait [#allocation18], 12480  }
  0xe9   :  { %3081 = vsyncadd [#allocation18], 4294954816  ;;  %v3107_v0 = vmov 0.0   ;;  %vm3108_vm0 = vmmov 0   ;;  %v2556_v1 = vld [vmem:[%s3714_s8] sm:$0xff]   ;;  %v2557_v2 = vld [vmem:[%s3714_s8 + $0x8] sm:$0xff]   ;;  %v213_v33 = vlaneseq }
  0xea   :  { %2467 = vmatprep.subr.bf16.mxu0 %v3107_v0  ;;  %2471 = vmatprep.mubr.msk.bf16.mxu0 %vm3108_vm0, %v3107_v0  ;;  %v201_v3 = vld [vmem:[#allocation2] sm:$0xff]  ;;  %v202_v4 = vld [vmem:[#allocation2 + $0x8] sm:$0xff]  ;;  %vm243_vm1 = vcmask 261120   ;;  %v3109_v6 = vmov 0.0|0.0   ;;  %v2306_v7 = vld [vmem:[#allocation14] ss:$0 sm:$0xff] }
  0xeb   :  { %2468 = vmatpush3.bf16.msra.mxu0 %v2556_v1  ;;  %v3371_v5 = vpack.c.bf16 %v202_v4, %v201_v3  ;;  %s3110_s8 = smov 96   ;;  %v3381_v16 = vld [vmem:[#allocation5] sm:$0xff]  ;;  %vm575_vm2 = vcmask 130048   ;;  %v2558_v17 = vld [vmem:[#allocation8 + $0x4] ss:$8 sps:$4 sm:$0xff]   ;;  %v3111_v20 = vmov 0   ;;  %vm2508_vm3 = vmpackc.low %vm243_vm1, %vm243_vm1 }
  0xec   :  { %2469 = vmatprep.subr.bf16.mxu0 %v3107_v0  ;;  %v2560_v18 = vld [vmem:[#allocation8] ss:$8 sps:$4 sm:$0xff]   ;;  %v2561_v19 = vld [vmem:[#allocation8 + $0x14] ss:$8 sps:$4 sm:$0xff]   ;;  %250 = vmatprep.subr.bf16.mxu1 %v2558_v17  ;;  %v2563_v21 = vld [vmem:[#allocation8 + $0x10] ss:$8 sps:$4 sm:$0xff]  }
  0xed   :  { %282 = vmatprep.mubr.bf16.mxu1 %v3111_v20  ;;  %251 = vmatpush1.bf16.msra.mxu1 %v2560_v18  ;;  %v203_v22 = vld [vmem:[#allocation2 + $0x10] sm:$0xff]  ;;  %v204_v23 = vld [vmem:[#allocation2 + $0x18] sm:$0xff]  ;;  %v3399_v34 = vshrl.u32 %v213_v33, 7  ;;  %v2568_v41 = vld [vmem:[#allocation11 + $0x50] sm:$0xff]   ;;  %s3748_s30 = sld [smem:[#allocation36_spill]]  ;;  %s3113_s11 = smov [#allocation20]  }
  0xee   :  { %252 = vmatprep.subr.bf16.mxu1 %v2561_v19  ;;  %v206_v24 = vpack.c.bf16 %v204_v23, %v203_v22  ;;  %v2310_v29 = vld [vmem:[#allocation16] ss:$0 sm:$0xff]  ;;  %v2566_v37 = vld [vmem:[#allocation11 + $0x48] sm:$0xff]   ;;  %v211_v42 = vld [vmem:[#allocation10] sm:$0x3]  ;;  %s2225_s1 = sshll.u32 %s3113_s11, 4  ;;  %s3645_s1 = int_to_ptr.vmem [resolvable:$true] %s2225_s1 }
  0xef   :  { %2470 = vmatpush3.bf16.msra.mxu0 %v2557_v2  ;;  %v2564_v35 = vld [vmem:[#allocation11 + $0x40] sm:$0xff]   ;;  %v3402_v38 = vsub.s32 1, %v3399_v34  ;;  %v3405_v39 = vsub.s32 0, %v3399_v34  ;;  %v2567_v40 = vld [vmem:[#allocation11 + $0x8] sm:$0xff]   ;;  %v2569_v47 = vld [vmem:[#allocation11 + $0x10] sm:$0xff]  }
  0xf0   :  { %2503 = vmatprep.subr.bf16.mxu0 %v3109_v6  ;;  %v2565_v36 = vld [vmem:[#allocation11] sm:$0xff]   ;;  %v2570_v51 = vld [vmem:[#allocation11 + $0x58] sm:$0xff]   ;;  %v2574_v2 = vld [vmem:[#allocation11 + $0x68] sm:$0xff]  }
  0xf1   :  { %253 = vmatpush1.bf16.msra.mxu1 %v2563_v21  ;;  %v3408_v43 = vrot.slane %v211_v42, %v3405_v39  ;;  %v3411_v45 = vrot.slane %v211_v42, %v3402_v38  ;;  %v2571_v58 = vld [vmem:[#allocation11 + $0x18] sm:$0xff]   ;;  %v2572_v60 = vld [vmem:[#allocation11 + $0x60] sm:$0xff]   ;;  %v2575_v3 = vld [vmem:[#allocation11 + $0x28] sm:$0xff]  }
  0xf2   :  { %2472 = vmatmul.mubr.msk.bf16.vlgmr.msra.gmra.mrb[0].mxu0 %vm243_vm1, %v3371_v5  ;;  %2424 = vmatprep.subr.bf16.mxu1 %v2564_v35  ;;  %v2573_v1 = vld [vmem:[#allocation11 + $0x20] sm:$0xff]   ;;  %v2576_v4 = vld [vmem:[#allocation11 + $0x70] sm:$0xff]   ;;  %v2591_v18 = vld [vmem:[#allocation17 + $0x124] ss:$48 sps:$4 sm:$0xff]  }
  0xf3   :  { %2479 = vmatprep.mubr.msk.f32.mxu0 %vm3108_vm0, %v3107_v0  ;;  %v2586_v17 = vld [vmem:[#allocation17 + $0xc0] ss:$48 sps:$4 sm:$0xff]   ;;  %v733_v21 = vld [vmem:[%s3748_s30] sm:$0x1] }
  0xf4   :  { %2287 = vmatmul.mubr.msk.bf16.vlgmr.msra.gmra.mrb[0].mxu1 %vm243_vm1, %v3371_v5  ;;  %v2589_v19 = vld [vmem:[#allocation17 + $0x120] ss:$48 sps:$4 sm:$0xff]   ;;  %vm734_vm4 = vcmp.lt.f32.partialorder %v733_v21, 0.5  ;;  %v2642_v21 = vld [vmem:[#allocation17 + $0x1a4] ss:$48 sps:$4 sm:$0xff]  }
  0xf5   :  { %292 = vmatprep.mubr.bf16.mxu1 %v3111_v20  ;;  %2425 = vmatpush3.bf16.msra.mxu1 %v2565_v36  ;;  %v735_v22 = vsel %vm734_vm4, 1, %v3111_v20 }
  0xf6   :  { %2426 = vmatprep.subr.bf16.mxu1 %v2566_v37  ;;  %v739_v23 = vrot.slane %v735_v22, %v3405_v39  ;;  %v2640_v22 = vld [vmem:[#allocation17 + $0x1a0] ss:$48 sps:$4 sm:$0xff]  }
  0xf8   :  { %vm740_vm5 = vcmp.eq.s32.totalorder %v739_v23, 1  ;;  %v2645_v23 = vld [vmem:[#allocation17 + $0x204] ss:$48 sps:$4 sm:$0xff]  }
  0xf9   :  { %2427 = vmatpush3.bf16.msra.mxu1 %v2567_v40  ;;  %v2597_v40 = vld [vmem:[#allocation17 + $0x1e4] ss:$48 sps:$4 sm:$0xff]  }
  0xfa   :  { %2428 = vmatprep.subr.bf16.mxu1 %v2568_v41 }
  0xfc   :  { %2288 = vmatmul.mubr.msk.bf16.gmra.mrb[4].mxu1 %vm243_vm1, %v206_v24 }
  0xfd   :  { %2429 = vmatpush3.bf16.msra.mxu1 %v2569_v47 }
  0xfe   :  { %2430 = vmatprep.subr.bf16.mxu1 %v2570_v51 }
 0x101   :  { %2431 = vmatpush3.bf16.msra.mxu1 %v2571_v58  ;;  %v2607_v58 = vld [vmem:[#allocation17 + $0x70] ss:$48 sps:$4 sm:$0xff]  }
 0x102   :  { %2432 = vmatprep.subr.bf16.mxu1 %v2572_v60  ;;  %v2610_v60 = vld [vmem:[#allocation17 + $0xd0] ss:$48 sps:$4 sm:$0xff]  }
 0x105   :  { %2433 = vmatpush3.bf16.msra.mxu1 %v2573_v1  ;;  %v2616_v1 = vld [vmem:[#allocation17 + $0x190] ss:$48 sps:$4 sm:$0xff]  }
 0x106   :  { %2434 = vmatprep.subr.bf16.mxu1 %v2574_v2  ;;  %v2621_v2 = vld [vmem:[#allocation17 + $0x1f4] ss:$48 sps:$4 sm:$0xff]  }
 0x109   :  { %2435 = vmatpush3.bf16.msra.mxu1 %v2575_v3  ;;  %v2619_v3 = vld [vmem:[#allocation17 + $0x1f0] ss:$48 sps:$4 sm:$0xff]  }
 0x10a   :  { %2436 = vmatprep.subr.bf16.mxu1 %v2576_v4  ;;  %v2622_v4 = vld [vmem:[#allocation17 + $0x250] ss:$48 sps:$4 sm:$0xff]  }
 0x1c5   :  { %v561_v8 = vpop.f32.mrb[0].mxu0 }
 0x1c6   :  { %v2473_v9 = vpop.f32.mrb[1].mxu0  ;;  %v562_v11 = vadd.f32 %v2306_v7, %v561_v8  ;;  %v2578_v8 = vld [vmem:[#allocation11 + $0x78] sm:$0xff]  }
 0x1c7   :  { %v564_v10 = vpop.f32.mrb[2].mxu0  ;;  %v284_v44 = vpop.f32.mrb[0].mxu1  ;;  %v2579_v9 = vld [vmem:[#allocation11 + $0x38] sm:$0xff]  }
 0x1c8   :  { %v565_v12 = vadd.f32 %v2306_v7, %v564_v10  ;;  %v2474_v13 = vpop.f32.mrb[3].mxu0  ;;  %v286_v46 = vpop.f32.mrb[1].mxu1  ;;  %v285_v48 = vadd.f32 %v284_v44, %v3408_v43  ;;  %v2577_v7 = vld [vmem:[#allocation11 + $0x30] sm:$0xff]   ;;  %v2582_v10 = vld [vmem:[#allocation17 + $0x4] ss:$48 sps:$4 sm:$0xff]  }
 0x1c9   :  { %v287_v49 = vadd.f32 %v286_v46, %v3411_v45  ;;  %v288_v50 = vpop.f32.mrb[2].mxu1  ;;  %2437 = vmatpush3.bf16.msra.mxu1 %v2577_v7  ;;  %v2583_v13 = vld [vmem:[#allocation17 + $0x60] ss:$48 sps:$4 sm:$0xff]   ;;  %v2624_v7 = vld [vmem:[#allocation17 + $0x254] ss:$48 sps:$4 sm:$0xff]  }
 0x1ca   :  { %v2504_v14 = vpack.c.bf16 %v565_v12, %v562_v11  ;;  %v3378_v15 = vpack.i.bf16 %v565_v12, %v562_v11  ;;  %v289_v52 = vadd.f32 %v288_v50, %v3408_v43  ;;  %v290_v53 = vpop.f32.mrb[3].mxu1  ;;  %v303_v54 = vmax.f32 %v285_v48, 0.0  ;;  %2438 = vmatprep.subr.bf16.mxu1 %v2578_v8  ;;  %v2580_v11 = vld [vmem:[#allocation17] ss:$48 sps:$4 sm:$0xff]   ;;  %v2585_v12 = vld [vmem:[#allocation17 + $0x64] ss:$48 sps:$4 sm:$0xff]  }
 0x1cb   :  { %v304_v55 = vmax.f32 %v287_v49, 0.0  ;;  %v291_v56 = vadd.f32 %v290_v53, %v3411_v45  ;;  %v2595_v44 = vld [vmem:[#allocation17 + $0x1e0] ss:$48 sps:$4 sm:$0xff]   ;;  %v2600_v50 = vld [vmem:[#allocation17 + $0x244] ss:$48 sps:$4 sm:$0xff]  }
 0x1cc   :  { %2547 = vrot.lane.b32.xlu0 %v3378_v15, %s3110_s8  ;;  %2505 = vmatpush3.bf16.msra.mxu0 %v2504_v14  ;;  %v305_v57 = vmax.f32 %v289_v52, 0.0  ;;  %v2588_v14 = vld [vmem:[#allocation17 + $0xc4] ss:$48 sps:$4 sm:$0xff]   ;;  %v2598_v52 = vld [vmem:[#allocation17 + $0x240] ss:$48 sps:$4 sm:$0xff]  }
 0x1cd   :  { %2506 = vmatprep.subr.bf16.mxu0 %v3109_v6  ;;  %v306_v59 = vmax.f32 %v291_v56, 0.0  ;;  %2439 = vmatpush3.bf16.msra.mxu1 %v2579_v9  ;;  %v2603_v53 = vld [vmem:[#allocation17 + $0x2a4] ss:$48 sps:$4 sm:$0xff]   ;;  %v2625_v9 = vld [vmem:[#allocation17 + $0x2b0] ss:$48 sps:$4 sm:$0xff]  }
 0x1ce   :  { %v311_v61 = vpack.c.bf16 %v305_v57, %v303_v54  ;;  %1548 = vmatprep.subr.bf16.mxu1 %v2582_v10  ;;  %v906_v54 = vld [vmem:[#allocation7] sm:$0xff] }
 0x1cf   :  { %2480 = vmatmul.mubr.msk.f32.vlgmr.msra.gmra.mrb[4].mxu0 %vm575_vm2, %v3381_v16  ;;  %v312_v62 = vpack.c.bf16 %v306_v59, %v304_v55  ;;  %v294_v63 = vpop.f32.mrb[4].mxu1  ;;  %v2604_v55 = vld [vmem:[#allocation17 + $0x10] ss:$48 sps:$4 sm:$0xff]   ;;  %v3431_v56 = vpack.c.bf16 %v906_v54, %v906_v54  ;;  %v2609_v57 = vld [vmem:[#allocation17 + $0x74] ss:$48 sps:$4 sm:$0xff]   ;;  %v1026_v54 = vsub.s32 4, %v3399_v34 }
 0x1d0   :  { %2486 = vmatprep.mubr.msk.f32.mxu0 %vm3108_vm0, %v3107_v0  ;;  %v2612_v59 = vld [vmem:[#allocation17 + $0xd4] ss:$48 sps:$4 sm:$0xff]  }
 0x1d1   :  { %482 = vmatprep.mubr.bf16.mxu1 %v312_v62  ;;  %v2613_v62 = vld [vmem:[#allocation17 + $0x130] ss:$48 sps:$4 sm:$0xff]   ;;  %v2627_v8 = vld [vmem:[#allocation17 + $0x2b4] ss:$48 sps:$4 sm:$0xff]  }
 0x1d2   :  { %483 = vmatmul.mubr.bf16.vlgmr.msra.gmra.mrb[8].mxu1 %v311_v61  ;;  %v2615_v61 = vld [vmem:[#allocation17 + $0x134] ss:$48 sps:$4 sm:$0xff]  }
 0x1d3   :  { %1549 = vmatpush1.bf16.msra.mxu1 %v2580_v11  ;;  %v2630_v10 = vld [vmem:[#allocation17 + $0x24] ss:$48 sps:$4 sm:$0xff]   ;;  %v2628_v11 = vld [vmem:[#allocation17 + $0x20] ss:$48 sps:$4 sm:$0xff]  }
 0x1d4   :  { %1550 = vmatprep.subr.bf16.mxu1 %v2585_v12  ;;  %v2633_v12 = vld [vmem:[#allocation17 + $0x84] ss:$48 sps:$4 sm:$0xff]  }
 0x1d7   :  { %1551 = vmatpush1.bf16.msra.mxu1 %v2583_v13  ;;  %v2631_v13 = vld [vmem:[#allocation17 + $0x80] ss:$48 sps:$4 sm:$0xff]  }
 0x1d8   :  { %1552 = vmatprep.subr.bf16.mxu1 %v2588_v14  ;;  %v2636_v14 = vld [vmem:[#allocation17 + $0xe4] ss:$48 sps:$4 sm:$0xff]  }
 0x1db   :  { %1553 = vmatpush1.bf16.msra.mxu1 %v2586_v17  ;;  %v2634_v17 = vld [vmem:[#allocation17 + $0xe0] ss:$48 sps:$4 sm:$0xff]  }
 0x1dc   :  { %1554 = vmatprep.subr.bf16.mxu1 %v2591_v18  ;;  %v2639_v18 = vld [vmem:[#allocation17 + $0x144] ss:$48 sps:$4 sm:$0xff]  }
 0x1df   :  { %1555 = vmatpush1.bf16.msra.mxu1 %v2589_v19  ;;  %v2637_v19 = vld [vmem:[#allocation17 + $0x140] ss:$48 sps:$4 sm:$0xff]  }
 0x23e   :  { %v2548_v25 = vpop.permute.xlu0 %2547 }
 0x23f   :  { %v2550_v26 = vunpack.i.h.bf16 %v2548_v25  ;;  %v2549_v27 = vunpack.i.l.bf16 %v2548_v25 }
 0x241   :  { %v2507_v28 = vpack.c.bf16 %v2550_v26, %v2549_v27 }
 0x243   :  { %2509 = vmatpush3.bf16.xpose.msk.msra.mxu0 %vm2508_vm3, %v2507_v28 }
 0x244   :  { %2510 = vmatprep.subr.bf16.mxu0 %v3109_v6 }
 0x2a2   :  { %v645_v30 = vpop.f32.mrb[4].mxu0 }
 0x2a3   :  { %v646_v31 = vadd.f32 %v2310_v29, %v645_v30  ;;  %v2481_v32 = vpop.f32.mrb[5].mxu0  ;;  %v2594_v29 = vld [vmem:[#allocation17 + $0x184] ss:$48 sps:$4 sm:$0xff]   ;;  %v295_v30 = vadd.f32 %v294_v63, %v3408_v43 }
 0x2a4   :  { %v2592_v32 = vld [vmem:[#allocation17 + $0x180] ss:$48 sps:$4 sm:$0xff]   ;;  %1556 = vmatprep.subr.bf16.mxu1 %v2594_v29  ;;  %v2618_v63 = vld [vmem:[#allocation17 + $0x194] ss:$48 sps:$4 sm:$0xff]  }
 0x2a5   :  { %2487 = vmatmul.mubr.msk.f32.vlgmr.msra.gmra.mrb[6].mxu0 %vm243_vm1, %v646_v31  ;;  %v296_v31 = vpop.f32.mrb[5].mxu1  ;;  %1557 = vmatpush1.bf16.msra.mxu1 %v2592_v32  ;;  %v307_v41 = vmax.f32 %v295_v30, 0.0  ;;  %v2649_v29 = vld [vmem:[#allocation17 + $0x2c0] ss:$48 sps:$4 sm:$0xff]  }
 0x2a6   :  { %2493 = vmatprep.mubr.msk.f32.mxu0 %vm3108_vm0, %v3107_v0  ;;  %v298_v33 = vpop.f32.mrb[6].mxu1  ;;  %v297_v36 = vadd.f32 %v296_v31, %v3411_v45  ;;  %1558 = vmatprep.subr.bf16.mxu1 %v2597_v40 }
 0x2a7   :  { %v300_v35 = vpop.f32.mrb[7].mxu1  ;;  %v299_v42 = vadd.f32 %v298_v33, %v3408_v43  ;;  %v2606_v43 = vld [vmem:[#allocation17 + $0x14] ss:$48 sps:$4 sm:$0xff]  }
 0x2a8   :  { %v301_v37 = vadd.f32 %v300_v35, %v3411_v45  ;;  %v308_v46 = vmax.f32 %v297_v36, 0.0  ;;  %v2601_v45 = vld [vmem:[#allocation17 + $0x2a0] ss:$48 sps:$4 sm:$0xff]   ;;  %v2440_v36 = vpop.f32.mrb[8].mxu1 }
 0x2a9   :  { %v309_v48 = vmax.f32 %v299_v42, 0.0  ;;  %1559 = vmatpush1.bf16.msra.mxu1 %v2595_v44  ;;  %v2289_v44 = vld [vmem:[#allocation13] ss:$0 sm:$0xff] }
 0x2aa   :  { %v310_v47 = vmax.f32 %v301_v37, 0.0  ;;  %1560 = vmatprep.subr.bf16.mxu1 %v2600_v50  ;;  %v2441_v37 = vpop.f32.mrb[9].mxu1 }
 0x2ab   :  { %v313_v51 = vpack.c.bf16 %v309_v48, %v307_v41  ;;  %v2443_v40 = vpop.f32.mrb[10].mxu1 }
 0x2ac   :  { %v314_v49 = vpack.c.bf16 %v310_v47, %v308_v46  ;;  %v2444_v41 = vpop.f32.mrb[11].mxu1  ;;  %v2442_v46 = vadd.f32 %v2441_v37, %v2440_v36 }
 0x2ad   :  { %1561 = vmatpush1.bf16.msra.mxu1 %v2598_v52  ;;  %v2445_v47 = vadd.f32 %v2444_v41, %v2443_v40 }
 0x2ae   :  { %490 = vmatprep.mubr.bf16.mxu1 %v314_v49  ;;  %1562 = vmatprep.subr.bf16.mxu1 %v2603_v53  ;;  %v485_v48 = vadd.f32 %v2442_v46, %v2289_v44 }
 0x2af   :  { %491 = vmatmul.mubr.bf16.gmra.mrb[12].mxu1 %v313_v51  ;;  %v488_v49 = vadd.f32 %v2445_v47, %v2289_v44  ;;  %v2654_v47 = vld [vmem:[#allocation17 + $0xc] ss:$48 sps:$4 sm:$0xff]  }
 0x2b0   :  { %1580 = vmatprep.mubr.bf16.mxu1 %v3111_v20  ;;  %499 = vst [vmem:[#allocation20] sm:$0xff] %v485_v48  ;;  %v2652_v48 = vld [vmem:[#allocation17 + $0x8] ss:$48 sps:$4 sm:$0xff]  }
 0x2b1   :  { %1563 = vmatpush1.bf16.msra.mxu1 %v2601_v45  ;;  %500 = vst [vmem:[#allocation20 + $0x8] sm:$0xff] %v488_v49  ;;  %v2657_v49 = vld [vmem:[#allocation17 + $0x6c] ss:$48 sps:$4 sm:$0xff]  }
 0x2b2   :  { %1630 = vmatprep.subr.bf16.mxu1 %v2606_v43 }
 0x2b7   :  { %1581 = vmatmul.mubr.bf16.vlgmr.msra.gmra.mrb[16].mxu1 %v3431_v56 }
 0x2b8   :  { %1631 = vmatpush1.bf16.msra.mxu1 %v2604_v55  ;;  %1662 = vmatprep.mubr.bf16.mxu1 %v3111_v20  ;;  %v1030_v55 = vsub.s32 5, %v3399_v34 }
 0x2b9   :  { %1632 = vmatprep.subr.bf16.mxu1 %v2609_v57 }
 0x2bc   :  { %1633 = vmatpush1.bf16.msra.mxu1 %v2607_v58 }
 0x2bd   :  { %1634 = vmatprep.subr.bf16.mxu1 %v2612_v59 }
 0x2c0   :  { %1635 = vmatpush1.bf16.msra.mxu1 %v2610_v60 }
 0x2c1   :  { %1636 = vmatprep.subr.bf16.mxu1 %v2615_v61 }
 0x2c4   :  { %1637 = vmatpush1.bf16.msra.mxu1 %v2613_v62 }
 0x2c5   :  { %1638 = vmatprep.subr.bf16.mxu1 %v2618_v63 }
 0x2c8   :  { %1639 = vmatpush1.bf16.msra.mxu1 %v2616_v1 }
 0x2c9   :  { %1640 = vmatprep.subr.bf16.mxu1 %v2621_v2 }
 0x2cc   :  { %1641 = vmatpush1.bf16.msra.mxu1 %v2619_v3 }
 0x2cd   :  { %1642 = vmatprep.subr.bf16.mxu1 %v2624_v7 }
 0x2d0   :  { %1643 = vmatpush1.bf16.msra.mxu1 %v2622_v4 }
 0x2d1   :  { %1644 = vmatprep.subr.bf16.mxu1 %v2627_v8 }
 0x2d4   :  { %1645 = vmatpush1.bf16.msra.mxu1 %v2625_v9 }
 0x2d5   :  { %1712 = vmatprep.subr.bf16.mxu1 %v2630_v10 }
 0x2d7   :  { %1663 = vmatmul.mubr.bf16.vlgmr.msra.gmra.mrb[20].mxu1 %v3431_v56 }
 0x2d8   :  { %1713 = vmatpush1.bf16.msra.mxu1 %v2628_v11  ;;  %1744 = vmatprep.mubr.bf16.mxu1 %v3111_v20 }
 0x2d9   :  { %1714 = vmatprep.subr.bf16.mxu1 %v2633_v12 }
 0x2dc   :  { %1715 = vmatpush1.bf16.msra.mxu1 %v2631_v13 }
 0x2dd   :  { %1716 = vmatprep.subr.bf16.mxu1 %v2636_v14 }
 0x2e0   :  { %1717 = vmatpush1.bf16.msra.mxu1 %v2634_v17 }
 0x2e1   :  { %1718 = vmatprep.subr.bf16.mxu1 %v2639_v18 }
 0x2e4   :  { %1719 = vmatpush1.bf16.msra.mxu1 %v2637_v19 }
 0x2e5   :  { %1720 = vmatprep.subr.bf16.mxu1 %v2642_v21 }
 0x2e8   :  { %1721 = vmatpush1.bf16.msra.mxu1 %v2640_v22 }
 0x2e9   :  { %1722 = vmatprep.subr.bf16.mxu1 %v2645_v23  ;;  %v3481_v23 = vld [vmem:[%s3718_s12 + $0x8] sm:$0xf] }
 0x378   :  { %v728_v24 = vpop.f32.mrb[6].mxu0 }
 0x379   :  { %v732_v25 = vmul.f32 0.17677669, %v728_v24  ;;  %v2488_v26 = vpop.f32.mrb[7].mxu0  ;;  %v2643_v24 = vld [vmem:[#allocation17 + $0x200] ss:$48 sps:$4 sm:$0xff]  }
 0x37a   :  { %1723 = vmatpush1.bf16.msra.mxu1 %v2643_v24  ;;  %v2646_v26 = vld [vmem:[#allocation17 + $0x260] ss:$48 sps:$4 sm:$0xff]   ;;  %v1043_v24 = vrot.slane %v3481_v23, %v3405_v39 }
 0x37b   :  { %v3422_v27 = vsel %vm740_vm5, -1e+09, %v732_v25  ;;  %v2648_v25 = vld [vmem:[#allocation17 + $0x264] ss:$48 sps:$4 sm:$0xff]  }
 0x37c   :  { %v742_v28 = vsel %vm575_vm2, %v3422_v27, -inf  ;;  %1724 = vmatprep.subr.bf16.mxu1 %v2648_v25 }
 0x37d   :  { %743 = vmax.xlane.f32.xlu0 %v742_v28  ;;  %v2651_v28 = vld [vmem:[#allocation17 + $0x2c4] ss:$48 sps:$4 sm:$0xff]  }
 0x37e   :  { %1725 = vmatpush1.bf16.msra.mxu1 %v2646_v26  ;;  %v1047_v26 = vrot.slane %v3481_v23, %v3402_v38 }
 0x37f   :  { %1726 = vmatprep.subr.bf16.mxu1 %v2651_v28 }
 0x382   :  { %1727 = vmatpush1.bf16.msra.mxu1 %v2649_v29  ;;  %v2446_v42 = vpop.f32.mrb[12].mxu1 }
 0x385   :  { %1745 = vmatmul.mubr.bf16.vlgmr.msra.gmra.mrb[24].mxu1 %v3431_v56 }
 0x40a   :  { %v744_v30 = vpop.xlane.xlu0 %743 }
 0x40b   :  { %v745_v31 = vsub.f32 %v3422_v27, %v744_v30  ;;  %v2447_v27 = vpop.f32.mrb[13].mxu1 }
 0x40c   :  { %v2449_v50 = vpop.f32.mrb[14].mxu1  ;;  %v2448_v52 = vadd.f32 %v2447_v27, %v2446_v42 }
 0x40d   :  { %v746_v32 = vmul.f32 1.442695, %v745_v31  ;;  %v2450_v51 = vpop.f32.mrb[15].mxu1 }
 0x40e   :  { %v2451_v53 = vadd.f32 %v2450_v51, %v2449_v50  ;;  %v1582_v45 = vpop.f32.mrb[16].mxu1  ;;  %v493_v57 = vadd.f32 %v2448_v52, %v2289_v44  ;;  %v2658_v50 = vld [vmem:[#allocation17 + $0xc8] ss:$48 sps:$4 sm:$0xff]  }
 0x40f   :  { %2724 = vpow2.f32 %v746_v32  ;;  %v1584_v43 = vpop.f32.mrb[17].mxu1  ;;  %v2661_v51 = vld [vmem:[#allocation17 + $0x128] ss:$48 sps:$4 sm:$0xff]  }
 0x410   :  { %v496_v58 = vadd.f32 %v2451_v53, %v2289_v44  ;;  %v1586_v60 = vpop.f32.mrb[18].mxu1  ;;  %501 = vst [vmem:[#allocation20 + $0x10] sm:$0xff] %v493_v57  ;;  %v2664_v52 = vld [vmem:[#allocation17 + $0x188] ss:$48 sps:$4 sm:$0xff]   ;;  %v2669_v53 = vld [vmem:[#allocation17 + $0x1ec] ss:$48 sps:$4 sm:$0xff]  }
 0x411   :  { %v1587_v61 = vpop.f32.mrb[19].mxu1  ;;  %v2678_v57 = vld [vmem:[#allocation17 + $0x1c] ss:$48 sps:$4 sm:$0xff]   ;;  %v2679_v60 = vld [vmem:[#allocation17 + $0x78] ss:$48 sps:$4 sm:$0xff]  }
 0x412   :  { %502 = vst [vmem:[#allocation20 + $0x18] sm:$0xff] %v496_v58  ;;  %v1664_v2 = vpop.f32.mrb[20].mxu1  ;;  %v2676_v58 = vld [vmem:[#allocation17 + $0x18] ss:$48 sps:$4 sm:$0xff]   ;;  %v2684_v61 = vld [vmem:[#allocation17 + $0xdc] ss:$48 sps:$4 sm:$0xff]  }
 0x413   :  { %v1666_v7 = vpop.f32.mrb[21].mxu1 }
 0x414   :  { %v1668_v10 = vpop.f32.mrb[22].mxu1 }
 0x415   :  { %v1669_v11 = vpop.f32.mrb[23].mxu1  ;;  %v2693_v10 = vld [vmem:[#allocation17 + $0x1fc] ss:$48 sps:$4 sm:$0xff]  }
 0x416   :  { %v2691_v11 = vld [vmem:[#allocation17 + $0x1f8] ss:$48 sps:$4 sm:$0xff]  }
 0x419   :  { %v3439_v33 = vpop.eup %2724 }
 0x41a   :  { %v748_v35 = vsel %vm575_vm2, %v3439_v33, 0.0 }
 0x41b   :  { %749 = vadd.xlane.f32.xlu1 %v748_v35 }
 0x42c   :  { %2552 = vrot.lane.b32.xlu1 %v3378_v15, %s3093_s21  ;;  %v3448_v15 = vld [vmem:[%s3718_s12] sm:$0xff] }
 0x42d   :  { %v1011_v59 = vrot.slane %v3448_v15, %v3405_v39  ;;  %v1027_v62 = vrot.slane %v3448_v15, %v1026_v54  ;;  %v1031_v63 = vrot.slane %v3448_v15, %v1030_v55  ;;  %v1015_v1 = vrot.slane %v3448_v15, %v3402_v38  ;;  %v2675_v54 = vld [vmem:[#allocation17 + $0x2ac] ss:$48 sps:$4 sm:$0xff]   ;;  %v2673_v55 = vld [vmem:[#allocation17 + $0x2a8] ss:$48 sps:$4 sm:$0xff]  }
 0x42f   :  { %v3458_v3 = vadd.f32 %v1582_v45, %v1011_v59  ;;  %v3460_v4 = vadd.f32 %v1664_v2, %v1027_v62  ;;  %v3462_v8 = vadd.f32 %v1584_v43, %v1015_v1  ;;  %v3464_v9 = vadd.f32 %v1666_v7, %v1031_v63  ;;  %v2672_v45 = vld [vmem:[#allocation17 + $0x24c] ss:$48 sps:$4 sm:$0xff]   ;;  %v2670_v43 = vld [vmem:[#allocation17 + $0x248] ss:$48 sps:$4 sm:$0xff]  }
 0x430   :  { %v2681_v59 = vld [vmem:[#allocation17 + $0x7c] ss:$48 sps:$4 sm:$0xff]   ;;  %v2682_v62 = vld [vmem:[#allocation17 + $0xd8] ss:$48 sps:$4 sm:$0xff]  }
 0x431   :  { %v1927_v12 = vadd.f32 %v3464_v9, %v3460_v4  ;;  %v1794_v13 = vadd.f32 %v3462_v8, %v3458_v3  ;;  %v1798_v14 = vmul.f32 %v3458_v3, %v3458_v3  ;;  %v1799_v17 = vmul.f32 %v3462_v8, %v3462_v8  ;;  %v2687_v63 = vld [vmem:[#allocation17 + $0x13c] ss:$48 sps:$4 sm:$0xff]   ;;  %v2685_v1 = vld [vmem:[#allocation17 + $0x138] ss:$48 sps:$4 sm:$0xff]  }
 0x432   :  { %v1931_v19 = vmul.f32 %v3460_v4, %v3460_v4  ;;  %v1932_v21 = vmul.f32 %v3464_v9, %v3464_v9  ;;  %v2690_v2 = vld [vmem:[#allocation17 + $0x19c] ss:$48 sps:$4 sm:$0xff]   ;;  %v2688_v7 = vld [vmem:[#allocation17 + $0x198] ss:$48 sps:$4 sm:$0xff]  }
 0x433   :  { %1928 = vadd.xlane.f32.xlu0 %v1927_v12  ;;  %v1800_v18 = vadd.f32 %v1799_v17, %v1798_v14  ;;  %v2696_v12 = vld [vmem:[#allocation17 + $0x25c] ss:$48 sps:$4 sm:$0xff]   ;;  %v2697_v17 = vld [vmem:[#allocation17 + $0x2b8] ss:$48 sps:$4 sm:$0xff]  }
 0x434   :  { %v1933_v22 = vadd.f32 %v1932_v21, %v1931_v19  ;;  %v2699_v14 = vld [vmem:[#allocation17 + $0x2bc] ss:$48 sps:$4 sm:$0xff]   ;;  %v2700_v19 = vld [vmem:[#allocation17 + $0x28] ss:$48 sps:$4 sm:$0xff]  }
 0x435   :  { %v2705_v21 = vld [vmem:[#allocation17 + $0x8c] ss:$48 sps:$4 sm:$0xff]  }
 0x437   :  { %1801 = vadd.xlane.f32.xlu0 %v1800_v18  ;;  %v2702_v18 = vld [vmem:[#allocation17 + $0x2c] ss:$48 sps:$4 sm:$0xff]  }
 0x43b   :  { %1934 = vadd.xlane.f32.xlu0 %v1933_v22  ;;  %v2703_v22 = vld [vmem:[#allocation17 + $0x88] ss:$48 sps:$4 sm:$0xff]  }
 0x450   :  { %1795 = vadd.xlane.f32.xlu1 %v1794_v13  ;;  %v2694_v13 = vld [vmem:[#allocation17 + $0x258] ss:$48 sps:$4 sm:$0xff]  }
 0x458   :  { %v1746_v28 = vpop.f32.mrb[24].mxu1 }
 0x459   :  { %v3487_v29 = vadd.f32 %v1746_v28, %v1043_v24  ;;  %v1748_v30 = vpop.f32.mrb[25].mxu1  ;;  %v2708_v24 = vld [vmem:[#allocation17 + $0xec] ss:$48 sps:$4 sm:$0xff]   ;;  %v2709_v28 = vld [vmem:[#allocation17 + $0x148] ss:$48 sps:$4 sm:$0xff]  }
 0x45a   :  { %v3489_v32 = vadd.f32 %v1748_v30, %v1047_v26  ;;  %v1750_v35 = vpop.f32.mrb[26].mxu1  ;;  %v2711_v26 = vld [vmem:[#allocation17 + $0x14c] ss:$48 sps:$4 sm:$0xff]  }
 0x45b   :  { %v1751_v40 = vpop.f32.mrb[27].mxu1  ;;  %v2714_v30 = vld [vmem:[#allocation17 + $0x1ac] ss:$48 sps:$4 sm:$0xff]  }
 0x45c   :  { %v2063_v41 = vadd.f32 %v3489_v32, %v3487_v29  ;;  %v2717_v35 = vld [vmem:[#allocation17 + $0x20c] ss:$48 sps:$4 sm:$0xff]  }
 0x45d   :  { %v2723_v40 = vld [vmem:[#allocation17 + $0x2cc] ss:$48 sps:$4 sm:$0xff]  }
 0x45e   :  { %2064 = vadd.xlane.f32.xlu1 %v2063_v41  ;;  %v2721_v41 = vld [vmem:[#allocation17 + $0x2c8] ss:$48 sps:$4 sm:$0xff]  }
 0x4a8   :  { %v750_v25 = vpop.xlane.xlu1 %749 }
 0x4a9   :  { %2726 = vrcp.f32 %v750_v25  ;;  %v2706_v25 = vld [vmem:[#allocation17 + $0xe8] ss:$48 sps:$4 sm:$0xff]  }
 0x4ac   :  { %v2553_v31 = vpop.permute.xlu1 %2552 }
 0x4ad   :  { %v2555_v36 = vunpack.i.h.bf16 %v2553_v31  ;;  %v2554_v37 = vunpack.i.l.bf16 %v2553_v31  ;;  %v2712_v31 = vld [vmem:[#allocation17 + $0x1a8] ss:$48 sps:$4 sm:$0xff]  }
 0x4af   :  { %v2511_v42 = vpack.c.bf16 %v2555_v36, %v2554_v37  ;;  %v2715_v36 = vld [vmem:[#allocation17 + $0x208] ss:$48 sps:$4 sm:$0xff]   ;;  %v2720_v37 = vld [vmem:[#allocation17 + $0x26c] ss:$48 sps:$4 sm:$0xff]  }
 0x4b1   :  { %2512 = vmatpush3.bf16.msra.mxu0 %v2511_v42 }
 0x4b2   :  { %2513 = vmatprep.subr.bf16.mxu0 %v3109_v6  ;;  %v2655_v6 = vld [vmem:[#allocation17 + $0x68] ss:$48 sps:$4 sm:$0xff]  }
 0x4b3   :  { %v2727_v44 = vpop.eup %2726 }
 0x4b4   :  { %v752_v46 = vmul.f32 %v2727_v44, %v3439_v33  ;;  %v2660_v33 = vld [vmem:[#allocation17 + $0xcc] ss:$48 sps:$4 sm:$0xff]  }
 0x4b6   :  { %2494 = vmatmul.mubr.msk.f32.vlgmr.msra.gmra.mrb[8].mxu0 %vm575_vm2, %v752_v46  ;;  %v753_v27 = vsel %vm575_vm2, %v752_v46, 0.0 }
 0x4b7   :  { %2515 = vmatpush3.bf16.msra.mxu0 %v3371_v5  ;;  %2500 = vmatprep.mubr.msk.f32.mxu0 %vm3108_vm0, %v3107_v0  ;;  %754 = vst [vmem:[#allocation23] sm:$0xff] %v753_v27  ;;  %v2663_v5 = vld [vmem:[#allocation17 + $0x12c] ss:$48 sps:$4 sm:$0xff]   ;;  %v1018_v27 = vsub.s32 2, %v3399_v34 }
 0x4b8   :  { %1589 = vmatprep.subr.bf16.mxu0 %v2654_v47  ;;  %v2666_v0 = vld [vmem:[#allocation17 + $0x18c] ss:$48 sps:$4 sm:$0xff]  }
 0x4be   :  { %2501 = vmatmul.mubr.msk.f32.vlgmr.msra.gmra.mrb[8].mxu0 %vm575_vm2, %v3381_v16  ;;  %v2667_v16 = vld [vmem:[#allocation17 + $0x1e8] ss:$48 sps:$4 sm:$0xff]  }
 0x4bf   :  { %1590 = vmatpush1.bf16.msra.mxu0 %v2652_v48  ;;  %1621 = vmatprep.mubr.bf16.mxu0 %v3111_v20 }
 0x4c0   :  { %1591 = vmatprep.subr.bf16.mxu0 %v2657_v49  ;;  %v1929_v47 = vpop.xlane.xlu0 %1928  ;;  %v1022_v49 = vsub.s32 3, %v3399_v34 }
 0x4c3   :  { %1592 = vmatpush1.bf16.msra.mxu0 %v2655_v6 }
 0x4c4   :  { %1593 = vmatprep.subr.bf16.mxu0 %v2660_v33  ;;  %v1019_v33 = vrot.slane %v3448_v15, %v1018_v27 }
 0x4c7   :  { %1594 = vmatpush1.bf16.msra.mxu0 %v2658_v50  ;;  %v1802_v50 = vpop.xlane.xlu0 %1801 }
 0x4c8   :  { %1595 = vmatprep.subr.bf16.mxu0 %v2663_v5 }
 0x4cb   :  { %1596 = vmatpush1.bf16.msra.mxu0 %v2661_v51  ;;  %v1803_v51 = vmul.f32 0.00390625, %v1802_v50 }
 0x4cc   :  { %1597 = vmatprep.subr.bf16.mxu0 %v2666_v0 }
 0x4cf   :  { %1598 = vmatpush1.bf16.msra.mxu0 %v2664_v52 }
 0x4d0   :  { %1599 = vmatprep.subr.bf16.mxu0 %v2669_v53 }
 0x4d3   :  { %1600 = vmatpush1.bf16.msra.mxu0 %v2667_v16  ;;  %v1930_v16 = vmul.f32 0.00390625, %v1929_v47 }
 0x4d4   :  { %1601 = vmatprep.subr.bf16.mxu0 %v2672_v45 }
 0x4d7   :  { %1602 = vmatpush1.bf16.msra.mxu0 %v2670_v43 }
 0x4d8   :  { %1603 = vmatprep.subr.bf16.mxu0 %v2675_v54 }
 0x4db   :  { %1604 = vmatpush1.bf16.msra.mxu0 %v2673_v55  ;;  %v1935_v55 = vpop.xlane.xlu0 %1934 }
 0x4dc   :  { %1671 = vmatprep.subr.bf16.mxu0 %v2678_v57 }
 0x4dd   :  { %v1796_v48 = vpop.xlane.xlu1 %1795 }
 0x4de   :  { %1622 = vmatmul.mubr.bf16.vlgmr.msra.gmra.mrb[12].mxu0 %v3431_v56  ;;  %v1797_v6 = vmul.f32 0.00390625, %v1796_v48 }
 0x4df   :  { %1672 = vmatpush1.bf16.msra.mxu0 %v2676_v58  ;;  %1703 = vmatprep.mubr.bf16.mxu0 %v3111_v20 }
 0x4e0   :  { %1673 = vmatprep.subr.bf16.mxu0 %v2681_v59  ;;  %v1804_v0 = vmul.f32 %v1797_v6, %v1797_v6 }
 0x4e3   :  { %1674 = vmatpush1.bf16.msra.mxu0 %v2679_v60  ;;  %v1805_v60 = vsub.f32 %v1803_v51, %v1804_v0 }
 0x4e4   :  { %1675 = vmatprep.subr.bf16.mxu0 %v2684_v61  ;;  %v1937_v61 = vmul.f32 %v1930_v16, %v1930_v16 }
 0x4e7   :  { %1676 = vmatpush1.bf16.msra.mxu0 %v2682_v62  ;;  %v1936_v62 = vmul.f32 0.00390625, %v1935_v55  ;;  %v2068_v55 = vmul.f32 %v3489_v32, %v3489_v32 }
 0x4e8   :  { %1677 = vmatprep.subr.bf16.mxu0 %v2687_v63 }
 0x4eb   :  { %1678 = vmatpush1.bf16.msra.mxu0 %v2685_v1  ;;  %v1808_v1 = vadd.f32 1e-05, %v1805_v60 }
 0x4ec   :  { %1679 = vmatprep.subr.bf16.mxu0 %v2690_v2  ;;  %v1938_v2 = vsub.f32 %v1936_v62, %v1937_v61 }
 0x4ed   :  { %2728 = vrsqrt.f32 %v1808_v1  ;;  %v1978_v1 = vld [vmem:[#allocation19 + $0x4] sm:$0x3] }
 0x4ef   :  { %1680 = vmatpush1.bf16.msra.mxu0 %v2688_v7  ;;  %v1941_v7 = vadd.f32 1e-05, %v1938_v2 }
 0x4f0   :  { %1681 = vmatprep.subr.bf16.mxu0 %v2693_v10  ;;  %v1806_v10 = vsub.f32 %v3458_v3, %v1797_v6  ;;  %v1826_v3 = vld [vmem:[%s3720_s14] sm:$0x3] }
 0x4f1   :  { %2730 = vrsqrt.f32 %v1941_v7 }
 0x4f3   :  { %1682 = vmatpush1.bf16.msra.mxu0 %v2691_v11  ;;  %v1807_v11 = vsub.f32 %v3462_v8, %v1797_v6  ;;  %v1939_v8 = vsub.f32 %v3460_v4, %v1930_v16 }
 0x4f4   :  { %1683 = vmatprep.subr.bf16.mxu0 %v2696_v12  ;;  %v1812_v12 = vld [vmem:[%s3719_s13] sm:$0x3] }
 0x4f7   :  { %1684 = vmatpush1.bf16.msra.mxu0 %v2694_v13  ;;  %v2729_v13 = vpop.eup %2728 }
 0x4f8   :  { %1685 = vmatprep.subr.bf16.mxu0 %v2699_v14  ;;  %v1034_v14 = vsub.s32 6, %v3399_v34 }
 0x4fb   :  { %1686 = vmatpush1.bf16.msra.mxu0 %v2697_v17  ;;  %v1817_v17 = vrot.slane %v1812_v12, %v3405_v39 }
 0x4fc   :  { %1753 = vmatprep.subr.bf16.mxu0 %v2702_v18  ;;  %v1038_v18 = vsub.s32 7, %v3399_v34 }
 0x4fe   :  { %1704 = vmatmul.mubr.bf16.vlgmr.msra.gmra.mrb[16].mxu0 %v3431_v56 }
 0x4ff   :  { %1754 = vmatpush1.bf16.msra.mxu0 %v2700_v19  ;;  %1785 = vmatprep.mubr.bf16.mxu0 %v3111_v20  ;;  %v2718_v20 = vld [vmem:[#allocation17 + $0x268] ss:$48 sps:$4 sm:$0xff]   ;;  %v1810_v19 = vmul.f32 %v2729_v13, %v1806_v10 }
 0x500   :  { %1755 = vmatprep.subr.bf16.mxu0 %v2705_v21  ;;  %v1811_v21 = vmul.f32 %v2729_v13, %v1807_v11  ;;  %v1983_v13 = vrot.slane %v1978_v1, %v3405_v39 }
 0x503   :  { %1756 = vmatpush1.bf16.msra.mxu0 %v2703_v22  ;;  %v1821_v22 = vrot.slane %v1812_v12, %v3402_v38 }
 0x504   :  { %1757 = vmatprep.subr.bf16.mxu0 %v2708_v24  ;;  %v1940_v24 = vsub.f32 %v3464_v9, %v1930_v16  ;;  %v1842_v16 = vld [vmem:[#allocation19] sm:$0x3] }
 0x505   :  { %v1851_v60 = vrot.slane %v1842_v16, %v3402_v38 }
 0x507   :  { %1758 = vmatpush1.bf16.msra.mxu0 %v2706_v25  ;;  %v2731_v25 = vpop.eup %2730 }
 0x508   :  { %1759 = vmatprep.subr.bf16.mxu0 %v2711_v26  ;;  %v2415_v26 = vld [vmem:[%s3719_s13 + $0x4] sm:$0x3] }
 0x509   :  { %v1951_v4 = vrot.slane %v2415_v26, %v3405_v39  ;;  %v1955_v9 = vrot.slane %v2415_v26, %v3402_v38 }
 0x50b   :  { %1760 = vmatpush1.bf16.msra.mxu0 %v2709_v28  ;;  %v1035_v28 = vrot.slane %v3448_v15, %v1034_v14  ;;  %v1987_v14 = vrot.slane %v1978_v1, %v3402_v38 }
 0x50c   :  { %1761 = vmatprep.subr.bf16.mxu0 %v2714_v30  ;;  %v1831_v30 = vrot.slane %v1826_v3, %v3405_v39 }
 0x50f   :  { %1762 = vmatpush1.bf16.msra.mxu0 %v2712_v31  ;;  %v1039_v31 = vrot.slane %v3448_v15, %v1038_v18 }
 0x510   :  { %1763 = vmatprep.subr.bf16.mxu0 %v2717_v35  ;;  %v1824_v35 = vmul.f32 %v1817_v17, %v1810_v19 }
 0x512   :  { %v1838_v48 = vadd.f32 %v1831_v30, %v1824_v35 }
 0x513   :  { %1764 = vmatpush1.bf16.msra.mxu0 %v2715_v36  ;;  %v1825_v36 = vmul.f32 %v1821_v22, %v1811_v21  ;;  %v1051_v22 = vrot.slane %v3481_v23, %v1018_v27 }
 0x514   :  { %1765 = vmatprep.subr.bf16.mxu0 %v2720_v37  ;;  %v1835_v37 = vrot.slane %v1826_v3, %v3402_v38  ;;  %v1055_v3 = vrot.slane %v3481_v23, %v1022_v49 }
 0x517   :  { %1766 = vmatpush1.bf16.msra.mxu0 %v2718_v20  ;;  %v1943_v20 = vmul.f32 %v2731_v25, %v1939_v8 }
 0x518   :  { %1767 = vmatprep.subr.bf16.mxu0 %v2723_v40  ;;  %v1944_v40 = vmul.f32 %v2731_v25, %v1940_v24 }
 0x519   :  { %v1958_v50 = vmul.f32 %v1951_v4, %v1943_v20 }
 0x51b   :  { %1768 = vmatpush1.bf16.msra.mxu0 %v2721_v41 }
 0x51e   :  { %1786 = vmatmul.mubr.bf16.vlgmr.msra.gmra.mrb[20].mxu0 %v3431_v56  ;;  %v1023_v56 = vrot.slane %v3448_v15, %v1022_v49 }
 0x591   :  { %v900_v42 = vpop.f32.mrb[8].mxu0 }
 0x592   :  { %v904_v44 = vsel %vm243_vm1, %v900_v42, 0.0  ;;  %v2502_v46 = vpop.f32.mrb[9].mxu0  ;;  %v2416_v42 = vld [vmem:[%s3720_s14 + $0x4] sm:$0x3] }
 0x593   :  { %905 = vst [vmem:[#allocation21] sm:$0xff] %v904_v44 }
 0x5b1   :  { %v1623_v5 = vpop.f32.mrb[12].mxu0 }
 0x5b2   :  { %v3517_v52 = vadd.f32 %v1623_v5, %v1019_v33  ;;  %v1625_v53 = vpop.f32.mrb[13].mxu0  ;;  %v1839_v33 = vadd.f32 %v1835_v37, %v1825_v36  ;;  %v1966_v5 = vrot.slane %v2416_v42, %v3405_v39 }
 0x5b3   :  { %v3519_v45 = vadd.f32 %v1625_v53, %v1023_v56  ;;  %v1627_v43 = vpop.f32.mrb[14].mxu0  ;;  %v1959_v56 = vmul.f32 %v1955_v9, %v1944_v40  ;;  %v2413_v9 = vld [vmem:[%s3719_s13 + $0x2] sm:$0x3] }
 0x5b4   :  { %v1628_v54 = vpop.f32.mrb[15].mxu0  ;;  %v1863_v58 = vmul.f32 %v3517_v52, %v3517_v52  ;;  %v1970_v43 = vrot.slane %v2416_v42, %v3402_v38  ;;  %v1973_v62 = vadd.f32 %v1966_v5, %v1958_v50 }
 0x5b5   :  { %v1859_v57 = vadd.f32 %v3519_v45, %v3517_v52  ;;  %v1864_v59 = vmul.f32 %v3519_v45, %v3519_v45  ;;  %v2067_v54 = vmul.f32 %v3487_v29, %v3487_v29 }
 0x5b6   :  { %v1975_v11 = vmax.f32 %v1973_v62, 0.0  ;;  %v2065_v62 = vpop.xlane.xlu1 %2064 }
 0x5b7   :  { %1860 = vadd.xlane.f32.xlu0 %v1859_v57  ;;  %v1865_v63 = vadd.f32 %v1864_v59, %v1863_v58  ;;  %v1840_v57 = vmax.f32 %v1838_v48, 0.0  ;;  %v1841_v58 = vmax.f32 %v1839_v33, 0.0  ;;  %v1847_v59 = vrot.slane %v1842_v16, %v3405_v39 }
 0x5b8   :  { %v2069_v2 = vadd.f32 %v2068_v55, %v2067_v54  ;;  %v1990_v18 = vmul.f32 %v1983_v13, %v1975_v11  ;;  %v1887_v48 = vrot.slane %v2413_v9, %v3402_v38  ;;  %v2066_v1 = vmul.f32 0.00390625, %v2065_v62 }
 0x5b9   :  { %v1854_v7 = vmul.f32 %v1847_v59, %v1840_v57  ;;  %v1855_v10 = vmul.f32 %v1851_v60, %v1841_v58 }
 0x5ba   :  { %v2073_v11 = vmul.f32 %v2066_v1, %v2066_v1 }
 0x5bb   :  { %1866 = vadd.xlane.f32.xlu0 %v1865_v63  ;;  %v1974_v63 = vadd.f32 %v1970_v43, %v1959_v56  ;;  %v1856_v17 = vadd.f32 %v1855_v10, %v1854_v7 }
 0x5bd   :  { %v1976_v12 = vmax.f32 %v1974_v63, 0.0 }
 0x5bf   :  { %v1991_v19 = vmul.f32 %v1987_v14, %v1976_v12 }
 0x5c1   :  { %v1992_v21 = vadd.f32 %v1991_v19, %v1990_v18  ;;  %v2417_v19 = vld [vmem:[%s3719_s13 + $0x6] sm:$0x3] }
 0x5d1   :  { %v1705_v41 = vpop.f32.mrb[16].mxu0 }
 0x5d2   :  { %v3553_v44 = vadd.f32 %v1705_v41, %v1035_v28  ;;  %v1707_v46 = vpop.f32.mrb[17].mxu0  ;;  %v2414_v41 = vld [vmem:[%s3720_s14 + $0x2] sm:$0x3] }
 0x5d3   :  { %v3555_v47 = vadd.f32 %v1707_v46, %v1039_v31  ;;  %v1709_v15 = vpop.f32.mrb[18].mxu0  ;;  %v1898_v56 = vrot.slane %v2414_v41, %v3405_v39  ;;  %v1902_v5 = vrot.slane %v2414_v41, %v3402_v38 }
 0x5d4   :  { %v1710_v6 = vpop.f32.mrb[19].mxu0  ;;  %v1999_v0 = vmul.f32 %v3553_v44, %v3553_v44  ;;  %v1883_v15 = vrot.slane %v2413_v9, %v3405_v39 }
 0x5d5   :  { %v1995_v51 = vadd.f32 %v3555_v47, %v3553_v44  ;;  %v2000_v53 = vmul.f32 %v3555_v47, %v3555_v47 }
 0x5d7   :  { %1996 = vadd.xlane.f32.xlu0 %v1995_v51  ;;  %v2001_v61 = vadd.f32 %v2000_v53, %v1999_v0  ;;  %v1910_v51 = vld [vmem:[#allocation19 + $0x2] sm:$0x3] }
 0x5db   :  { %2002 = vadd.xlane.f32.xlu0 %v2001_v61 }
 0x5df   :  { %2070 = vadd.xlane.f32.xlu0 %v2069_v2 }
 0x5e3   :  { %1857 = vadd.xlane.f32.xlu0 %v1856_v17 }
 0x5e7   :  { %1993 = vadd.xlane.f32.xlu0 %v1992_v21  ;;  %v2418_v21 = vld [vmem:[%s3720_s14 + $0x6] sm:$0x3] }
 0x5f1   :  { %v1787_v8 = vpop.f32.mrb[20].mxu0 }
 0x5f2   :  { %v3579_v24 = vadd.f32 %v1787_v8, %v1051_v22  ;;  %v1789_v25 = vpop.f32.mrb[21].mxu0  ;;  %v2019_v8 = vrot.slane %v2417_v19, %v3405_v39 }
 0x5f3   :  { %v3581_v26 = vadd.f32 %v1789_v25, %v1055_v3  ;;  %v1791_v28 = vpop.f32.mrb[22].mxu0  ;;  %v2023_v25 = vrot.slane %v2417_v19, %v3402_v38 }
 0x5f4   :  { %v1792_v30 = vpop.f32.mrb[23].mxu0  ;;  %v2135_v35 = vmul.f32 %v3579_v24, %v3579_v24 }
 0x5f5   :  { %v2131_v31 = vadd.f32 %v3581_v26, %v3579_v24  ;;  %v2136_v27 = vmul.f32 %v3581_v26, %v3581_v26  ;;  %v2419_v30 = vld [vmem:[%s3719_s13 + $0x8] sm:$0x3] }
 0x5f7   :  { %2132 = vadd.xlane.f32.xlu1 %v2131_v31  ;;  %v2137_v34 = vadd.f32 %v2136_v27, %v2135_v35  ;;  %v2034_v27 = vrot.slane %v2418_v21, %v3405_v39 }
 0x5fb   :  { %2138 = vadd.xlane.f32.xlu1 %v2137_v34  ;;  %v2038_v34 = vrot.slane %v2418_v21, %v3402_v38 }
 0x644   :  { %v1861_v23 = vpop.xlane.xlu0 %1860 }
 0x645   :  { %v1862_v49 = vmul.f32 0.00390625, %v1861_v23  ;;  %v2046_v23 = vld [vmem:[#allocation19 + $0x6] sm:$0x3] }
 0x646   :  { %v2051_v9 = vrot.slane %v2046_v23, %v3405_v39  ;;  %v2055_v41 = vrot.slane %v2046_v23, %v3402_v38 }
 0x647   :  { %v1869_v37 = vmul.f32 %v1862_v49, %v1862_v49  ;;  %v1871_v42 = vsub.f32 %v3517_v52, %v1862_v49  ;;  %v1872_v46 = vsub.f32 %v3519_v45, %v1862_v49  ;;  %v1915_v52 = vrot.slane %v1910_v51, %v3405_v39 }
 0x648   :  { %v1867_v36 = vpop.xlane.xlu0 %1866  ;;  %v1919_v45 = vrot.slane %v1910_v51, %v3402_v38  ;;  %v2076_v49 = vsub.f32 %v3489_v32, %v2066_v1  ;;  %v2114_v32 = vld [vmem:[#allocation19 + $0x8] sm:$0x3] }
 0x649   :  { %v1868_v20 = vmul.f32 0.00390625, %v1867_v36  ;;  %v2119_v51 = vrot.slane %v2114_v32, %v3405_v39 }
 0x64b   :  { %v1870_v40 = vsub.f32 %v1868_v20, %v1869_v37  ;;  %v2087_v20 = vrot.slane %v2419_v30, %v3405_v39 }
 0x64d   :  { %v1873_v4 = vadd.f32 1e-05, %v1870_v40  ;;  %v2091_v40 = vrot.slane %v2419_v30, %v3402_v38 }
 0x64f   :  { %2732 = vrsqrt.f32 %v1873_v4 }
 0x659   :  { %v2733_v6 = vpop.eup %2732 }
 0x65a   :  { %v1875_v33 = vmul.f32 %v2733_v6, %v1871_v42  ;;  %v1876_v50 = vmul.f32 %v2733_v6, %v1872_v46 }
 0x65c   :  { %v1890_v0 = vmul.f32 %v1883_v15, %v1875_v33  ;;  %v1891_v53 = vmul.f32 %v1887_v48, %v1876_v50 }
 0x65e   :  { %v1905_v16 = vadd.f32 %v1898_v56, %v1890_v0  ;;  %v1906_v43 = vadd.f32 %v1902_v5, %v1891_v53  ;;  %v2123_v0 = vrot.slane %v2114_v32, %v3402_v38 }
 0x660   :  { %v1907_v54 = vmax.f32 %v1905_v16, 0.0  ;;  %v1908_v55 = vmax.f32 %v1906_v43, 0.0 }
 0x662   :  { %v1922_v57 = vmul.f32 %v1915_v52, %v1907_v54  ;;  %v1923_v58 = vmul.f32 %v1919_v45, %v1908_v55 }
 0x664   :  { %v1997_v59 = vpop.xlane.xlu0 %1996  ;;  %v1924_v60 = vadd.f32 %v1923_v58, %v1922_v57 }
 0x665   :  { %v1998_v61 = vmul.f32 0.00390625, %v1997_v59 }
 0x666   :  { %1925 = vadd.xlane.f32.xlu1 %v1924_v60 }
 0x667   :  { %v2005_v2 = vmul.f32 %v1998_v61, %v1998_v61  ;;  %v2007_v22 = vsub.f32 %v3553_v44, %v1998_v61  ;;  %v2008_v3 = vsub.f32 %v3555_v47, %v1998_v61  ;;  %v2420_v44 = vld [vmem:[%s3720_s14 + $0x8] sm:$0x3]  ;;  %v2075_v47 = vsub.f32 %v3487_v29, %v2066_v1 }
 0x668   :  { %v2003_v63 = vpop.xlane.xlu0 %2002  ;;  %v2102_v42 = vrot.slane %v2420_v44, %v3405_v39  ;;  %v2106_v46 = vrot.slane %v2420_v44, %v3402_v38 }
 0x669   :  { %v2004_v7 = vmul.f32 0.00390625, %v2003_v63 }
 0x66b   :  { %v2006_v10 = vsub.f32 %v2004_v7, %v2005_v2 }
 0x66c   :  { %v2071_v12 = vpop.xlane.xlu0 %2070 }
 0x66d   :  { %v2009_v13 = vadd.f32 1e-05, %v2006_v10  ;;  %v2072_v14 = vmul.f32 0.00390625, %v2071_v12  ;;  %v2421_v10 = vld [vmem:[%s3719_s13 + $0xa] sm:$0x3]  ;;  %s3112_s13 = smov [#allocation21]  }
 0x66f   :  { %2734 = vrsqrt.f32 %v2009_v13  ;;  %v2074_v17 = vsub.f32 %v2072_v14, %v2073_v11  ;;  %v2422_v11 = vld [vmem:[%s3720_s14 + $0xa] sm:$0x3]  ;;  %v2155_v14 = vrot.slane %v2421_v10, %v3405_v39  ;;  %s2238_s14 = sshll.u32 %s3112_s13, 4  ;;  %s2239_s14 = int_to_ptr.vmem [resolvable:$true] %s2238_s14 }
 0x670   :  { %s2982_s22 = scalar_lea.vmem %s2239_s14, 128  ;;  %p2987_p5 = scmp.lt.s32.totalorder %s2239_s14, %s2239_s14 }
 0x671   :  { %v2077_v18 = vadd.f32 1e-05, %v2074_v17  ;;  %v2159_v17 = vrot.slane %v2421_v10, %v3402_v38  ;;  %p2983_p4 = scmp.ne.s32.totalorder %s2239_s14, %s2982_s22  ;;  %p2988_p6 = scmp.lt.s32.totalorder %s2982_s22, %s2982_s22 }
 0x673   :  { %2736 = vrsqrt.f32 %v2077_v18  ;;  %p2989_p7 = por %p2988_p6, %p2987_p5 }
 0x675   :  { %p2990_p8 = pnand %p2989_p7, %p2983_p4 }
 0x679   :  { %v2735_v28 = vpop.eup %2734 }
 0x67a   :  { %v2011_v31 = vmul.f32 %v2735_v28, %v2007_v22  ;;  %v2012_v35 = vmul.f32 %v2735_v28, %v2008_v3  ;;  %v2170_v22 = vrot.slane %v2422_v11, %v3405_v39  ;;  %v2174_v3 = vrot.slane %v2422_v11, %v3402_v38 }
 0x67c   :  { %v2026_v36 = vmul.f32 %v2019_v8, %v2011_v31  ;;  %v2027_v37 = vmul.f32 %v2023_v25, %v2012_v35  ;;  %v2182_v8 = vld [vmem:[#allocation19 + $0xa] sm:$0x3] }
 0x67d   :  { %v2737_v4 = vpop.eup %2736 }
 0x67e   :  { %v2041_v15 = vadd.f32 %v2034_v27, %v2026_v36  ;;  %v2042_v48 = vadd.f32 %v2038_v34, %v2027_v37  ;;  %v2079_v29 = vmul.f32 %v2737_v4, %v2075_v47  ;;  %v2080_v6 = vmul.f32 %v2737_v4, %v2076_v49 }
 0x680   :  { %v2043_v33 = vmax.f32 %v2041_v15, 0.0  ;;  %v2044_v50 = vmax.f32 %v2042_v48, 0.0  ;;  %v2094_v56 = vmul.f32 %v2087_v20, %v2079_v29  ;;  %v2095_v5 = vmul.f32 %v2091_v40, %v2080_v6 }
 0x682   :  { %v2058_v53 = vmul.f32 %v2051_v9, %v2043_v33  ;;  %v2059_v16 = vmul.f32 %v2055_v41, %v2044_v50  ;;  %v2109_v43 = vadd.f32 %v2102_v42, %v2094_v56  ;;  %v2110_v52 = vadd.f32 %v2106_v46, %v2095_v5 }
 0x684   :  { %v2133_v45 = vpop.xlane.xlu1 %2132  ;;  %v2060_v54 = vadd.f32 %v2059_v16, %v2058_v53  ;;  %v2111_v55 = vmax.f32 %v2109_v43, 0.0  ;;  %v2112_v57 = vmax.f32 %v2110_v52, 0.0 }
 0x685   :  { %v2134_v58 = vmul.f32 0.00390625, %v2133_v45 }
 0x686   :  { %2061 = vadd.xlane.f32.xlu1 %v2060_v54  ;;  %v2126_v59 = vmul.f32 %v2119_v51, %v2111_v55  ;;  %v2127_v60 = vmul.f32 %v2123_v0, %v2112_v57 }
 0x687   :  { %v2141_v63 = vmul.f32 %v2134_v58, %v2134_v58  ;;  %v2143_v12 = vsub.f32 %v3579_v24, %v2134_v58  ;;  %v2144_v13 = vsub.f32 %v3581_v26, %v2134_v58  ;;  %v2187_v24 = vrot.slane %v2182_v8, %v3405_v39 }
 0x688   :  { %v2139_v61 = vpop.xlane.xlu1 %2138  ;;  %v2128_v62 = vadd.f32 %v2127_v60, %v2126_v59  ;;  %v2191_v26 = vrot.slane %v2182_v8, %v3402_v38 }
 0x689   :  { %v2140_v1 = vmul.f32 0.00390625, %v2139_v61 }
 0x68a   :  { %2129 = vadd.xlane.f32.xlu0 %v2128_v62 }
 0x68b   :  { %v2142_v2 = vsub.f32 %v2140_v1, %v2141_v63 }
 0x68d   :  { %v2145_v7 = vadd.f32 1e-05, %v2142_v2 }
 0x68f   :  { %2738 = vrsqrt.f32 %v2145_v7 }
 0x699   :  { %v2739_v18 = vpop.eup %2738 }
 0x69a   :  { %v2147_v19 = vmul.f32 %v2739_v18, %v2143_v12  ;;  %v2148_v21 = vmul.f32 %v2739_v18, %v2144_v13 }
 0x69c   :  { %v2162_v25 = vmul.f32 %v2155_v14, %v2147_v19  ;;  %v2163_v28 = vmul.f32 %v2159_v17, %v2148_v21 }
 0x69e   :  { %v2177_v30 = vadd.f32 %v2170_v22, %v2162_v25  ;;  %v2178_v31 = vadd.f32 %v2174_v3, %v2163_v28 }
 0x6a0   :  { %v2179_v35 = vmax.f32 %v2177_v30, 0.0  ;;  %v2180_v27 = vmax.f32 %v2178_v31, 0.0 }
 0x6a2   :  { %v2194_v34 = vmul.f32 %v2187_v24, %v2179_v35  ;;  %v2195_v23 = vmul.f32 %v2191_v26, %v2180_v27 }
 0x6a4   :  { %v2196_v44 = vadd.f32 %v2195_v23, %v2194_v34 }
 0x6a6   :  { %2197 = vadd.xlane.f32.xlu1 %v2196_v44 }
 0x6a7   :  { %2993 = shalt.err (!%p2990_p8)
}
 0x6a8   :  { %s2994_s2 = scalar_lea.hbm %s3724_s18, 128 }
 0x6a9   :  { %p2995_p9 = scmp.ne.s32.totalorder %s3724_s18, %s2994_s2  ;;  %p2998_p10 = scmp.lt.u32.totalorder %s2994_s2, %s3724_s18 }
 0x6ab   :  { %p3000_p11 = pnand %p2998_p10, %p2995_p9 }
 0x6ad   :  { %3003 = shalt.err (!%p3000_p11)
}
 0x6ae   :  { %2241 = dma.vmem_to_hbm [thread:$0]  %s2239_s14, 128, %s3724_s18, [#allocation22]  }
 0x6af   :  { %s3004_s4 = scalar_lea.vmem %s3645_s1, 512  ;;  %p3009_p13 = scmp.lt.s32.totalorder %s3645_s1, %s3645_s1 }
 0x6b0   :  { %p3005_p12 = scmp.ne.s32.totalorder %s3645_s1, %s3004_s4  ;;  %p3010_p0 = scmp.lt.s32.totalorder %s3004_s4, %s3004_s4 }
 0x6b2   :  { %p3011_p1 = por %p3010_p0, %p3009_p13 }
 0x6b4   :  { %p3012_p2 = pnand %p3011_p1, %p3005_p12 }
 0x6b6   :  { %3015 = shalt.err (!%p3012_p2)
}
 0x6b7   :  { %s3016_s7 = scalar_lea.hbm %s3723_s17, 512 }
 0x6b8   :  { %p3017_p3 = scmp.ne.s32.totalorder %s3723_s17, %s3016_s7  ;;  %p3020_p4 = scmp.lt.u32.totalorder %s3016_s7, %s3723_s17 }
 0x6ba   :  { %p3022_p5 = pnand %p3020_p4, %p3017_p3 }
 0x6bc   :  { %3025 = shalt.err (!%p3022_p5)
}
 0x6bd   :  { %2231 = dma.vmem_to_hbm [thread:$0]  %s3645_s1, 512, %s3723_s17, [#allocation4], %s3746_s9, %s3746_s9, %s3745_s24  }
 0x6be   :  { %s3114_s5 = smov [#allocation23]  }
 0x6bf   :  { %s2248_s12 = sshll.u32 %s3114_s5, 4  ;;  %s2249_s12 = int_to_ptr.vmem [resolvable:$true] %s2248_s12 }
 0x6c0   :  { %s3026_s13 = scalar_lea.vmem %s2249_s12, 128  ;;  %p3031_p7 = scmp.lt.s32.totalorder %s2249_s12, %s2249_s12 }
 0x6c1   :  { %p3027_p6 = scmp.ne.s32.totalorder %s2249_s12, %s3026_s13  ;;  %p3032_p8 = scmp.lt.s32.totalorder %s3026_s13, %s3026_s13 }
 0x6c3   :  { %p3033_p9 = por %p3032_p8, %p3031_p7 }
 0x6c5   :  { %p3034_p10 = pnand %p3033_p9, %p3027_p6 }
 0x6c7   :  { %3037 = shalt.err (!%p3034_p10)
}
 0x6c8   :  { %s3038_s22 = scalar_lea.hbm %s3725_s19, 128 }
 0x6c9   :  { %p3039_p11 = scmp.ne.s32.totalorder %s3725_s19, %s3038_s22  ;;  %p3042_p12 = scmp.lt.u32.totalorder %s3038_s22, %s3725_s19 }
 0x6cb   :  { %p3044_p13 = pnand %p3042_p12, %p3039_p11 }
 0x6cd   :  { %3047 = shalt.err (!%p3044_p13)
}
 0x6ce   :  { %2251 = dma.vmem_to_hbm [thread:$0]  %s2249_s12, 128, %s3725_s19, [#allocation22]   ;;  %v1858_v38 = vpop.xlane.xlu0 %1857  ;;  %vm2199_vm6 = vcmask 7168   ;;  %vm2201_vm7 = vcmask 15360   ;;  %vm2203_vm8 = vcmask 23552   ;;  %vm2205_vm9 = vcmask 31744  }
 0x6cf   :  { %vm2207_vm10 = vcmask 39936   ;;  %vm2209_vm11 = vcmask 48128   ;;  %v2423_v41 = vld [vmem:[%s3722_s16] ss:$0 sm:$0xff]  ;;  %s3115_s19 = smov [#allocation24]  }
 0x6d0   :  { %s2258_s25 = sshll.u32 %s3115_s19, 4  ;;  %s2259_s25 = int_to_ptr.vmem [resolvable:$true] %s2258_s25 }
 0x6d1   :  { %s3048_s27 = scalar_lea.vmem %s2259_s25, 128  ;;  %p3053_p1 = scmp.lt.s32.totalorder %s2259_s25, %s2259_s25 }
 0x6d2   :  { %v1994_v47 = vpop.xlane.xlu0 %1993  ;;  %p3049_p0 = scmp.ne.s32.totalorder %s2259_s25, %s3048_s27  ;;  %p3054_p2 = scmp.lt.s32.totalorder %s3048_s27, %s3048_s27 }
 0x6d4   :  { %p3055_p3 = por %p3054_p2, %p3053_p1 }
 0x6d6   :  { %p3056_p4 = pnand %p3055_p3, %p3049_p0 }
 0x6f3   :  { %v1926_v39 = vpop.xlane.xlu1 %1925 }
 0x6f4   :  { %v2200_v49 = vsel %vm2199_vm6, %v1858_v38, %v1926_v39 }
 0x6f5   :  { %v2202_v20 = vsel %vm2201_vm7, %v2200_v49, %v1994_v47 }
 0x713   :  { %v2062_v36 = vpop.xlane.xlu1 %2061 }
 0x714   :  { %v2204_v40 = vsel %vm2203_vm8, %v2202_v20, %v2062_v36 }
 0x717   :  { %v2130_v37 = vpop.xlane.xlu0 %2129 }
 0x718   :  { %v2206_v4 = vsel %vm2205_vm9, %v2204_v40, %v2130_v37 }
 0x733   :  { %v2198_v9 = vpop.xlane.xlu1 %2197 }
 0x734   :  { %v2208_v42 = vsel %vm2207_vm10, %v2206_v4, %v2198_v9 }
 0x735   :  { %v2210_v46 = vsel %vm2209_vm11, %v2208_v42, 0.0 }
 0x736   :  { %v2218_v15 = vadd.f32 %v2423_v41, %v2210_v46 }
 0x738   :  { %2219 = vst [vmem:[#allocation24] sm:$0xff] %v2218_v15 }
 0x739   :  { %3059 = shalt.err (!%p3056_p4)
}
 0x73a   :  { %s3749_s3 = sld [smem:[#allocation40_spill]] }
 0x740   :  { %s3060_s4 = scalar_lea.hbm %s3749_s3, 128 }
 0x741   :  { %p3061_p5 = scmp.ne.s32.totalorder %s3749_s3, %s3060_s4  ;;  %p3064_p6 = scmp.lt.u32.totalorder %s3060_s4, %s3749_s3 }
 0x743   :  { %p3066_p7 = pnand %p3064_p6, %p3061_p5 }
 0x745   :  { %3069 = shalt.err (!%p3066_p7)
}
 0x746   :  { %2261 = dma.vmem_to_hbm [thread:$0]  %s2259_s25, 128, %s3749_s3, [#allocation25]  }
 0x747   :  { %3082 = dma.done.wait [#allocation4], 512  }
 0x748   :  { %3083 = vsyncadd [#allocation4], 4294966784 }
 0x749   :  { %3084 = dma.done.wait [#allocation22], 256  }
 0x74a   :  { %3085 = vsyncadd [#allocation22], 4294967040 }
 0x74b   :  { %3086 = dma.done.wait [#allocation25], 128  }
 0x74c   :  { %3087 = vsyncadd [#allocation25], 4294967168 }
 0x74d   :  { %2274 = vsyncpa [#allocation3], 1 }
 0x74e   :  { %2275 = vsyncpa [#allocation6], 1 }
 0x74f   :  { %2276 = vsyncpa [#allocation9], 1 }
 0x750   :  { %2277 = vsyncpa [#allocation12], 1 }
 0x751   :  { %2278 = vsyncpa [#allocation15], 1 }
 0x752   :  { %2279 = vsyncpa [#allocation18], 1 }
 0x753   :  { %2280 = vsyncpa [#allocation4], 1 }
 0x754   :  { %2281 = vsyncpa [#allocation22], 1 }
 0x755   :  { %2282 = vsyncpa [#allocation25], 1 }

</bundles_post_ra>
